<compile_context>
chip_gen: v7x
topology: tpu7x:2x2x1
jax: 0.10.0
libtpu: 0.0.40
codegen_flags: <defaults>
</compile_context>

<pallas_src>
import jax
import jax.numpy as jnp
from jax.experimental import pallas as pl
from jax.experimental.pallas import tpu as pltpu


def _round_up(n, m):
    return ((n + m - 1) // m) * m


# --------------------------------------------------------------------------- #
# Kernel: one batch tile -> 3 matmuls (layer1, layer2, fused heads)
# --------------------------------------------------------------------------- #
def encoder_kernel(x_ref, w1_ref, b1_ref, w2_ref, b2_ref, wh_ref, bh_ref,
                   out_ref):
    """
    x_ref  : [tb, K1p]   bf16   (K1p = round_up(input_dim, 128))
    w1_ref : [K1p, Hp]   bf16   (Hp  = round_up(hidden_dim, 128))
    w2_ref : [Hp,  Hp]   bf16
    wh_ref : [Hp, OUTp]  bf16   (Wm | Wv, OUTp = round_up(2*latent_dim, 128))
    b*_ref : [1, F]      fp32
    out_ref: [tb, OUTp]  fp32   (mean | log_var | zero-pad), lane-dense
    """
    slope = 0.2

    # Layer 1: Linear + LeakyReLU(0.2)   (bf16 operands, fp32 accumulation)
    h = jnp.dot(x_ref[...], w1_ref[...], preferred_element_type=jnp.float32)
    h = h + b1_ref[...]
    h = jnp.maximum(h, slope * h)

    # Layer 2: Linear + LeakyReLU(0.2)
    h = jnp.dot(h.astype(w2_ref.dtype), w2_ref[...],
                preferred_element_type=jnp.float32)
    h = h + b2_ref[...]
    h = jnp.maximum(h, slope * h)

    # Fused heads: one lane-dense [tb, OUTp] store (mean | log_var | pad).
    o = jnp.dot(h.astype(wh_ref.dtype), wh_ref[...],
                preferred_element_type=jnp.float32)
    out_ref[...] = (o + bh_ref[...]).astype(out_ref.dtype)


# --------------------------------------------------------------------------- #
# One-time weight packing (fuse heads, pad to 128 multiples, cast to bf16)
# --------------------------------------------------------------------------- #
def prepare_encoder_params(params, compute_dtype=jnp.bfloat16):
    d_in, h_dim = params["w1"].shape
    l_dim = params["wm"].shape[1]
    k1p = _round_up(d_in, 128)
    hp = _round_up(h_dim, 128)
    outp = _round_up(2 * l_dim, 128)

    def pad2(a, rows, cols):
        return jnp.pad(a, ((0, rows - a.shape[0]), (0, cols - a.shape[1])))

    def padb(b, n):
        return jnp.pad(b.astype(jnp.float32), (0, n - b.shape[0])).reshape(1, n)

    w1 = pad2(params["w1"], k1p, hp).astype(compute_dtype)
    w2 = pad2(params["w2"], hp, hp).astype(compute_dtype)
    wh = pad2(jnp.concatenate([params["wm"], params["wv"]], axis=1),
              hp, outp).astype(compute_dtype)
    b1 = padb(params["b1"], hp)
    b2 = padb(params["b2"], hp)
    bh = padb(jnp.concatenate([params["bm"], params["bv"]], axis=0), outp)

    return dict(
        w1=w1, b1=b1, w2=w2, b2=b2, wh=wh, bh=bh,
        dims=dict(d_in=d_in, h=h_dim, l=l_dim, k1p=k1p, hp=hp, outp=outp),
        compute_dtype=compute_dtype,
    )


# --------------------------------------------------------------------------- #
# Forward wrapper (hot path)
# --------------------------------------------------------------------------- #
def encoder_forward(x, packed, *, batch_tile=None):
    """x: [B, input_dim] float32. Returns (mean, log_var), each [B, L] fp32."""
    dims = packed["dims"]
    d_in, l_dim = dims["d_in"], dims["l"]
    k1p, hp, outp = dims["k1p"], dims["hp"], dims["outp"]
    cd = packed["compute_dtype"]

    B = x.shape[0]
    assert x.shape[1] == d_in, (x.shape, d_in)

    # Single grid step for small/moderate B (grid is a serial loop on
    # single-core v5e/v6e); 1024-row 16-aligned tiles for large B.
    if batch_tile is None:
        tb = B if B <= 1024 else 1024
    else:
        tb = int(batch_tile)
    bp = _round_up(B, tb)
    grid = (bp // tb,)

    # Activation prep: cast to compute dtype, zero-pad K and batch (exact).
    x_c = x.astype(cd)
    if bp != B or k1p != d_in:
        x_c = jnp.pad(x_c, ((0, bp - B), (0, k1p - d_in)))

    full = lambda r, c: pl.BlockSpec((r, c), lambda i: (0, 0))

    out = pl.pallas_call(
        encoder_kernel,
        out_shape=jax.ShapeDtypeStruct((bp, outp), jnp.float32),
        grid_spec=pltpu.PrefetchScalarGridSpec(
            num_scalar_prefetch=0,
            grid=grid,
            in_specs=[
                pl.BlockSpec((tb, k1p), lambda i: (i, 0)),   # x tile
                full(k1p, hp), full(1, hp),                  # W1, b1
                full(hp, hp), full(1, hp),                   # W2, b2
                full(hp, outp), full(1, outp),               # W_heads, b_heads
            ],
            out_specs=pl.BlockSpec((tb, outp), lambda i: (i, 0)),
        ),
        compiler_params=pltpu.CompilerParams(
            dimension_semantics=("parallel",),
            # Footprint at these sizes is only a few MiB (weights ~2 MiB bf16,
            # activations < 2 MiB per 1024-row tile); 32 MiB fits every chip.
            vmem_limit_bytes=32 * 1024 * 1024,
        ),
    )(x_c, packed["w1"], packed["b1"], packed["w2"], packed["b2"],
      packed["wh"], packed["bh"])

    mean = out[:B, :l_dim]
    log_var = out[:B, l_dim:2 * l_dim]
    return mean, log_var


# --------------------------------------------------------------------------- #
# Params init (matches PyTorch nn.Linear default; weights stored transposed)
# --------------------------------------------------------------------------- #
def init_encoder_params(key, input_dim, hidden_dim, latent_dim):
    def linear(k, fan_in, fan_out):
        kw, kb = jax.random.split(k)
        bound = 1.0 / jnp.sqrt(fan_in)
        w = jax.random.uniform(kw, (fan_in, fan_out), jnp.float32, -bound, bound)
        b = jax.random.uniform(kb, (fan_out,), jnp.float32, -bound, bound)
        return w, b

    k1, k2, k3, k4 = jax.random.split(key, 4)
    w1, b1 = linear(k1, input_dim, hidden_dim)
    w2, b2 = linear(k2, hidden_dim, hidden_dim)
    wm, bm = linear(k3, hidden_dim, latent_dim)
    wv, bv = linear(k4, hidden_dim, latent_dim)
    return dict(w1=w1, b1=b1, w2=w2, b2=b2, wm=wm, bm=bm, wv=wv, bv=bv)


# --------------------------------------------------------------------------- #
# Plain-JAX reference (same bf16-operand / fp32-accumulate numerics)
# --------------------------------------------------------------------------- #
def encoder_reference(x, p, compute_dtype=jnp.bfloat16):
    cd = compute_dtype
    lrelu = lambda v: jnp.where(v > 0, v, 0.2 * v)
    h = lrelu(jnp.dot(x.astype(cd), p["w1"].astype(cd),
                      preferred_element_type=jnp.float32) + p["b1"])
    h = lrelu(jnp.dot(h.astype(cd), p["w2"].astype(cd),
                      preferred_element_type=jnp.float32) + p["b2"])
    mean = jnp.dot(h.astype(cd), p["wm"].astype(cd),
                   preferred_element_type=jnp.float32) + p["bm"]
    log_var = jnp.dot(h.astype(cd), p["wv"].astype(cd),
                      preferred_element_type=jnp.float32) + p["bv"]
    return mean, log_var


if __name__ == "__main__":
    # Module constants: hidden_dim=400, latent_dim=200; MNIST-like input.
    batch = 64
    input_dim = 784
    hidden_dim = 400
    latent_dim = 200

    key = jax.random.PRNGKey(0)
    kx, kp = jax.random.split(key)
    x = jax.random.normal(kx, (batch, input_dim), jnp.float32)
    params = init_encoder_params(kp, input_dim, hidden_dim, latent_dim)

    # One-time weight packing (hoisted off the hot path).
    packed = jax.tree_util.tree_map(lambda a: a, prepare_encoder_params(params))

    mean, log_var = encoder_forward(x, packed)
    jax.block_until_ready((mean, log_var))

    mean_ref, log_var_ref = encoder_reference(x, params)
    assert mean.shape == (batch, latent_dim)
    assert log_var.shape == (batch, latent_dim)
    assert jnp.allclose(mean, mean_ref, atol=2e-2, rtol=2e-2)
    assert jnp.allclose(log_var, log_var_ref, atol=2e-2, rtol=2e-2)

    print("KERNEL_OK")
</pallas_src>

<mosaic_0001>
module attributes {stable_mosaic.version = 11 : i64} {
  func.func @encoder_kernel(%arg0: i32, %arg1: memref<64x896xbf16, #tpu.memory_space<vmem>>, %arg2: memref<896x512xbf16, #tpu.memory_space<vmem>>, %arg3: memref<1x512xf32, #tpu.memory_space<vmem>>, %arg4: memref<512x512xbf16, #tpu.memory_space<vmem>>, %arg5: memref<1x512xf32, #tpu.memory_space<vmem>>, %arg6: memref<512x512xbf16, #tpu.memory_space<vmem>>, %arg7: memref<1x512xf32, #tpu.memory_space<vmem>>, %arg8: memref<64x512xf32, #tpu.memory_space<vmem>>) attributes {dimension_semantics = [#tpu.dimension_semantics<parallel>], iteration_bounds = array<i64: 1>, scalar_prefetch = 0 : i64, scratch_operands = 0 : i64, tpu.core_type = #tpu.core_type<tc>, window_params = [{transform_indices = @transform_0, window_bounds = array<i64: 64, 896>}, {pipeline_mode = #tpu.pipeline_mode<synchronous>, transform_indices = @transform_1, window_bounds = array<i64: 896, 512>}, {pipeline_mode = #tpu.pipeline_mode<synchronous>, transform_indices = @transform_2, window_bounds = array<i64: 1, 512>}, {pipeline_mode = #tpu.pipeline_mode<synchronous>, transform_indices = @transform_3, window_bounds = array<i64: 512, 512>}, {pipeline_mode = #tpu.pipeline_mode<synchronous>, transform_indices = @transform_4, window_bounds = array<i64: 1, 512>}, {pipeline_mode = #tpu.pipeline_mode<synchronous>, transform_indices = @transform_5, window_bounds = array<i64: 512, 512>}, {pipeline_mode = #tpu.pipeline_mode<synchronous>, transform_indices = @transform_6, window_bounds = array<i64: 1, 512>}, {transform_indices = @transform_7, window_bounds = array<i64: 64, 512>}]} {
    %c0 = arith.constant 0 : index
    %c0_0 = arith.constant 0 : index
    %0 = vector.load %arg1[%c0, %c0_0] : memref<64x896xbf16, #tpu.memory_space<vmem>>, vector<64x896xbf16>
    %c0_1 = arith.constant 0 : index
    %c0_2 = arith.constant 0 : index
    %1 = vector.load %arg2[%c0_1, %c0_2] : memref<896x512xbf16, #tpu.memory_space<vmem>>, vector<896x512xbf16>
    %cst = arith.constant dense<0.000000e+00> : vector<64x512xf32>
    %2 = tpu.matmul %0, %1, %cst {dimension_numbers = #tpu.dot_dimension_numbers<[1], [0], [0], [1], [0, 0, 1, 1], [], []>} : vector<64x896xbf16>, vector<896x512xbf16>, vector<64x512xf32> -> vector<64x512xf32>
    %c0_3 = arith.constant 0 : index
    %c0_4 = arith.constant 0 : index
    %3 = vector.load %arg3[%c0_3, %c0_4] : memref<1x512xf32, #tpu.memory_space<vmem>>, vector<1x512xf32>
    %4 = vector.broadcast %3 : vector<1x512xf32> to vector<64x512xf32>
    %5 = arith.addf %2, %4 : vector<64x512xf32>
    %cst_5 = arith.constant 2.000000e-01 : f32
    %6 = vector.broadcast %cst_5 : f32 to vector<64x512xf32>
    %7 = arith.mulf %6, %5 : vector<64x512xf32>
    %8 = arith.maximumf %5, %7 : vector<64x512xf32>
    %9 = arith.truncf %8 : vector<64x512xf32> to vector<64x512xbf16>
    %c0_6 = arith.constant 0 : index
    %c0_7 = arith.constant 0 : index
    %10 = vector.load %arg4[%c0_6, %c0_7] : memref<512x512xbf16, #tpu.memory_space<vmem>>, vector<512x512xbf16>
    %cst_8 = arith.constant dense<0.000000e+00> : vector<64x512xf32>
    %11 = tpu.matmul %9, %10, %cst_8 {dimension_numbers = #tpu.dot_dimension_numbers<[1], [0], [0], [1], [0, 0, 1, 1], [], []>} : vector<64x512xbf16>, vector<512x512xbf16>, vector<64x512xf32> -> vector<64x512xf32>
    %c0_9 = arith.constant 0 : index
    %c0_10 = arith.constant 0 : index
    %12 = vector.load %arg5[%c0_9, %c0_10] : memref<1x512xf32, #tpu.memory_space<vmem>>, vector<1x512xf32>
    %13 = vector.broadcast %12 : vector<1x512xf32> to vector<64x512xf32>
    %14 = arith.addf %11, %13 : vector<64x512xf32>
    %cst_11 = arith.constant 2.000000e-01 : f32
    %15 = vector.broadcast %cst_11 : f32 to vector<64x512xf32>
    %16 = arith.mulf %15, %14 : vector<64x512xf32>
    %17 = arith.maximumf %14, %16 : vector<64x512xf32>
    %18 = arith.truncf %17 : vector<64x512xf32> to vector<64x512xbf16>
    %c0_12 = arith.constant 0 : index
    %c0_13 = arith.constant 0 : index
    %19 = vector.load %arg6[%c0_12, %c0_13] : memref<512x512xbf16, #tpu.memory_space<vmem>>, vector<512x512xbf16>
    %cst_14 = arith.constant dense<0.000000e+00> : vector<64x512xf32>
    %20 = tpu.matmul %18, %19, %cst_14 {dimension_numbers = #tpu.dot_dimension_numbers<[1], [0], [0], [1], [0, 0, 1, 1], [], []>} : vector<64x512xbf16>, vector<512x512xbf16>, vector<64x512xf32> -> vector<64x512xf32>
    %c0_15 = arith.constant 0 : index
    %c0_16 = arith.constant 0 : index
    %21 = vector.load %arg7[%c0_15, %c0_16] : memref<1x512xf32, #tpu.memory_space<vmem>>, vector<1x512xf32>
    %22 = vector.broadcast %21 : vector<1x512xf32> to vector<64x512xf32>
    %23 = arith.addf %20, %22 : vector<64x512xf32>
    %c0_17 = arith.constant 0 : index
    %c0_18 = arith.constant 0 : index
    %24 = vector.load %arg8[%c0_17, %c0_18] : memref<64x512xf32, #tpu.memory_space<vmem>>, vector<64x512xf32>
    tpu.vector_store %arg8[%c0_17, %c0_18], %23 {strides = array<i32>} : memref<64x512xf32, #tpu.memory_space<vmem>>, vector<64x512xf32>,
    return
  }
  func.func @transform_0(%arg0: i32) -> (i32, i32) {
    %c0_i32 = arith.constant 0 : i32
    %c0_i32_0 = arith.constant 0 : i32
    return %arg0, %c0_i32 : i32, i32
  }
  func.func @transform_1(%arg0: i32) -> (i32, i32) {
    %c0_i32 = arith.constant 0 : i32
    %c0_i32_0 = arith.constant 0 : i32
    %c0_i32_1 = arith.constant 0 : i32
    return %c0_i32, %c0_i32_0 : i32, i32
  }
  func.func @transform_2(%arg0: i32) -> (i32, i32) {
    %c0_i32 = arith.constant 0 : i32
    %c0_i32_0 = arith.constant 0 : i32
    %c0_i32_1 = arith.constant 0 : i32
    return %c0_i32, %c0_i32_0 : i32, i32
  }
  func.func @transform_3(%arg0: i32) -> (i32, i32) {
    %c0_i32 = arith.constant 0 : i32
    %c0_i32_0 = arith.constant 0 : i32
    %c0_i32_1 = arith.constant 0 : i32
    return %c0_i32, %c0_i32_0 : i32, i32
  }
  func.func @transform_4(%arg0: i32) -> (i32, i32) {
    %c0_i32 = arith.constant 0 : i32
    %c0_i32_0 = arith.constant 0 : i32
    %c0_i32_1 = arith.constant 0 : i32
    return %c0_i32, %c0_i32_0 : i32, i32
  }
  func.func @transform_5(%arg0: i32) -> (i32, i32) {
    %c0_i32 = arith.constant 0 : i32
    %c0_i32_0 = arith.constant 0 : i32
    %c0_i32_1 = arith.constant 0 : i32
    return %c0_i32, %c0_i32_0 : i32, i32
  }
  func.func @transform_6(%arg0: i32) -> (i32, i32) {
    %c0_i32 = arith.constant 0 : i32
    %c0_i32_0 = arith.constant 0 : i32
    %c0_i32_1 = arith.constant 0 : i32
    return %c0_i32, %c0_i32_0 : i32, i32
  }
  func.func @transform_7(%arg0: i32) -> (i32, i32) {
    %c0_i32 = arith.constant 0 : i32
    %c0_i32_0 = arith.constant 0 : i32
    return %arg0, %c0_i32 : i32, i32
  }
}

</mosaic_0001>

<bundles_post_ra>
// kernel: tpu_custom_call.1
= control target key start
LH: loop header
LB: loop body
LE: loop exit
PB: predicated region body
PF: predicated region fallthrough
CT: control target
= control target key end

     0   :  { %12 = vsyncpa [#allocation3], 0  ;;  %s6647_s0 = inlined_call_operand.hbm [shape: bf16[64,896], index: 0, kind: input, shape index: {}]   ;;  %s6648_s1 = inlined_call_operand.hbm [shape: bf16[896,512], index: 1, kind: input, shape index: {}]   ;;  %s6649_s2 = inlined_call_operand.vmem [shape: f32[1,512], index: 2, kind: input, shape index: {}]   ;;  %s6650_s3 = inlined_call_operand.hbm [shape: bf16[512,512], index: 3, kind: input, shape index: {}]   ;;  %s6651_s4 = inlined_call_operand.vmem [shape: f32[1,512], index: 4, kind: input, shape index: {}]   ;;  %s6652_s5 = inlined_call_operand.hbm [shape: bf16[512,512], index: 5, kind: input, shape index: {}]   ;;  %s6653_s6 = inlined_call_operand.vmem [shape: f32[1,512], index: 6, kind: input, shape index: {}]   ;;  %s6654_s7 = inlined_call_operand.hbm [shape: f32[64,512], index: 7, kind: output, shape index: {}]  }
   0x1   :  { %13 = vsyncpa [#allocation6], 0 }
   0x2   :  { %14 = vsyncpa [#allocation9], 0 }
   0x3   :  { %15 = vsyncpa [#allocation4], 0  ;;  %s6238_s24 = smov [#allocation5]   ;;  %s6120_s28 = scalar_lea.hbm %s6648_s1, 28672 }
   0x4   :  { %s33_s25 = sshll.u32 %s6238_s24, 4  ;;  %p6121_p0 = scmp.ne.s32.totalorder %s6648_s1, %s6120_s28  ;;  %s34_s25 = int_to_ptr.vmem [resolvable:$true] %s33_s25 }
   0x5   :  { %p6124_p1 = scmp.lt.u32.totalorder %s6120_s28, %s6648_s1 }
   0x7   :  { %p6126_p2 = pnand %p6124_p1, %p6121_p0 }
   0x9   :  { %6129 = shalt.err (!%p6126_p2)
}
   0xa   :  { %s6130_s10 = scalar_lea.vmem %s34_s25, 28672  ;;  %p6135_p4 = scmp.lt.s32.totalorder %s34_s25, %s34_s25 }
   0xb   :  { %p6131_p3 = scmp.ne.s32.totalorder %s34_s25, %s6130_s10  ;;  %p6136_p5 = scmp.lt.s32.totalorder %s6130_s10, %s6130_s10 }
   0xd   :  { %p6137_p6 = por %p6136_p5, %p6135_p4 }
   0xf   :  { %p6138_p7 = pnand %p6137_p6, %p6131_p3 }
  0x11   :  { %6141 = shalt.err (!%p6138_p7)
}
  0x12   :  { %s6239_s11 = smov 256   ;;  %s6240_s12 = smov 16  }
  0x13   :  { %39 = dma.hbm_to_vmem [thread:$0]  %s6648_s1, 28672, %s34_s25, [#allocation6], %s6239_s11, %s6239_s11, %s6240_s12  }
  0x14   :  { %s6241_s15 = smov [#allocation2]   ;;  %s6142_s19 = scalar_lea.hbm %s6647_s0, 3584 }
  0x15   :  { %s21_s16 = sshll.u32 %s6241_s15, 4  ;;  %p6143_p8 = scmp.ne.s32.totalorder %s6647_s0, %s6142_s19  ;;  %s22_s16 = int_to_ptr.vmem [resolvable:$true] %s21_s16 }
  0x16   :  { %p6146_p9 = scmp.lt.u32.totalorder %s6142_s19, %s6647_s0 }
  0x18   :  { %p6148_p10 = pnand %p6146_p9, %p6143_p8 }
  0x1a   :  { %6151 = shalt.err (!%p6148_p10)
}
  0x1b   :  { %s6152_s24 = scalar_lea.vmem %s22_s16, 3584  ;;  %p6157_p12 = scmp.lt.s32.totalorder %s22_s16, %s22_s16 }
  0x1c   :  { %p6153_p11 = scmp.ne.s32.totalorder %s22_s16, %s6152_s24  ;;  %p6158_p13 = scmp.lt.s32.totalorder %s6152_s24, %s6152_s24 }
  0x1e   :  { %p6159_p0 = por %p6158_p13, %p6157_p12 }
  0x20   :  { %p6160_p1 = pnand %p6159_p0, %p6153_p11 }
  0x22   :  { %6163 = shalt.err (!%p6160_p1)
}
  0x23   :  { %s6242_s1 = smov 448   ;;  %s6243_s25 = smov 28  }
  0x24   :  { %27 = dma.hbm_to_vmem [thread:$0]  %s6647_s0, 3584, %s22_s16, [#allocation3], %s6242_s1, %s6242_s1, %s6243_s25  }
  0x25   :  { %s6244_s28 = smov [#allocation7]   ;;  %s6245_s30 = smov [#allocation8]  }
  0x26   :  { %s47_s29 = sshll.u32 %s6244_s28, 4  ;;  %s61_s8 = sshll.u32 %s6245_s30, 4  ;;  %s48_s29 = int_to_ptr.vmem [resolvable:$true] %s47_s29  ;;  %s6317_s8 = int_to_ptr.vmem [resolvable:$true] %s61_s8 }
  0x27   :  { %s6164_s13 = scalar_lea.hbm %s6650_s3, 16384 }
  0x28   :  { %p6165_p2 = scmp.ne.s32.totalorder %s6650_s3, %s6164_s13  ;;  %p6168_p3 = scmp.lt.u32.totalorder %s6164_s13, %s6650_s3 }
  0x2a   :  { %p6170_p4 = pnand %p6168_p3, %p6165_p2 }
  0x2c   :  { %6173 = shalt.err (!%p6170_p4)
}
  0x2d   :  { %s6174_s0 = scalar_lea.vmem %s48_s29, 16384  ;;  %p6179_p6 = scmp.lt.s32.totalorder %s48_s29, %s48_s29 }
  0x2e   :  { %p6175_p5 = scmp.ne.s32.totalorder %s48_s29, %s6174_s0  ;;  %p6180_p7 = scmp.lt.s32.totalorder %s6174_s0, %s6174_s0 }
  0x30   :  { %p6181_p8 = por %p6180_p7, %p6179_p6 }
  0x32   :  { %p6182_p9 = pnand %p6181_p8, %p6175_p5 }
  0x34   :  { %6185 = shalt.err (!%p6182_p9)
}
  0x35   :  { %53 = dma.hbm_to_vmem [thread:$0]  %s6650_s3, 16384, %s48_s29, [#allocation6], %s6239_s11, %s6239_s11, %s6240_s12  }
  0x36   :  { %s6186_s22 = scalar_lea.hbm %s6652_s5, 16384 }
  0x37   :  { %p6187_p10 = scmp.ne.s32.totalorder %s6652_s5, %s6186_s22  ;;  %p6190_p11 = scmp.lt.u32.totalorder %s6186_s22, %s6652_s5 }
  0x39   :  { %p6192_p12 = pnand %p6190_p11, %p6187_p10 }
  0x3b   :  { %6195 = shalt.err (!%p6192_p12)
}
  0x3c   :  { %s6196_s26 = scalar_lea.vmem %s6317_s8, 16384  ;;  %p6201_p0 = scmp.lt.s32.totalorder %s6317_s8, %s6317_s8 }
  0x3d   :  { %p6197_p13 = scmp.ne.s32.totalorder %s6317_s8, %s6196_s26  ;;  %p6202_p1 = scmp.lt.s32.totalorder %s6196_s26, %s6196_s26 }
  0x3f   :  { %p6203_p2 = por %p6202_p1, %p6201_p0 }
  0x41   :  { %p6204_p3 = pnand %p6203_p2, %p6197_p13 }
  0x43   :  { %6207 = shalt.err (!%p6204_p3)
}
  0x44   :  { %67 = dma.hbm_to_vmem [thread:$0]  %s6652_s5, 16384, %s6317_s8, [#allocation9], %s6239_s11, %s6239_s11, %s6240_s12  }
  0x45   :  { %6230 = dma.done.wait [#allocation3], 3584  }
  0x46   :  { %6231 = vsyncadd [#allocation3], 4294963712 }
  0x47   :  { %6232 = dma.done.wait [#allocation6], 45056  }
  0x48   :  { %6233 = vsyncadd [#allocation6], 4294922240 }
  0x49   :  { %6234 = dma.done.wait [#allocation9], 16384  }
  0x4a   :  { %6235 = vsyncadd [#allocation9], 4294950912  ;;  %v5360_v0 = vld [vmem:[#allocation5 + $0x4] ss:$16 sps:$4 sm:$0xff]   ;;  %v5362_v1 = vld [vmem:[#allocation5 + $0xc] ss:$16 sps:$4 sm:$0xff]  }
  0x4b   :  { %1625 = vmatprep.subr.bf16.mxu0 %v5360_v0  ;;  %v5364_v2 = vld [vmem:[#allocation5] ss:$16 sps:$4 sm:$0xff]   ;;  %v5365_v3 = vld [vmem:[#allocation5 + $0x8] ss:$16 sps:$4 sm:$0xff]   ;;  %1917 = vmatprep.subr.bf16.mxu1 %v5362_v1  ;;  %v5366_v4 = vld [vmem:[#allocation5 + $0x24] ss:$16 sps:$4 sm:$0xff]  }
  0x4c   :  { %1626 = vmatpush1.bf16.msra.mxu0 %v5364_v2  ;;  %1918 = vmatpush1.bf16.msra.mxu1 %v5365_v3  ;;  %v5368_v5 = vld [vmem:[#allocation5 + $0x2c] ss:$16 sps:$4 sm:$0xff]   ;;  %v5370_v6 = vld [vmem:[#allocation5 + $0x20] ss:$16 sps:$4 sm:$0xff]   ;;  %v5371_v7 = vld [vmem:[#allocation5 + $0x28] ss:$16 sps:$4 sm:$0xff]  }
  0x4d   :  { %1627 = vmatprep.subr.bf16.mxu0 %v5366_v4  ;;  %1919 = vmatprep.subr.bf16.mxu1 %v5368_v5  ;;  %v5372_v8 = vld [vmem:[#allocation5 + $0x44] ss:$16 sps:$4 sm:$0xff]   ;;  %v5374_v9 = vld [vmem:[#allocation5 + $0x4c] ss:$16 sps:$4 sm:$0xff]   ;;  %v5376_v10 = vld [vmem:[#allocation5 + $0x40] ss:$16 sps:$4 sm:$0xff]  }
  0x4e   :  { %v5377_v11 = vld [vmem:[#allocation5 + $0x48] ss:$16 sps:$4 sm:$0xff]   ;;  %v5378_v12 = vld [vmem:[#allocation5 + $0x64] ss:$16 sps:$4 sm:$0xff]   ;;  %v5380_v13 = vld [vmem:[#allocation5 + $0x6c] ss:$16 sps:$4 sm:$0xff]  }
  0x4f   :  { %v5382_v14 = vld [vmem:[#allocation5 + $0x60] ss:$16 sps:$4 sm:$0xff]   ;;  %v5383_v15 = vld [vmem:[#allocation5 + $0x68] ss:$16 sps:$4 sm:$0xff]   ;;  %v5384_v16 = vld [vmem:[#allocation5 + $0x84] ss:$16 sps:$4 sm:$0xff]  }
  0x50   :  { %1628 = vmatpush1.bf16.msra.mxu0 %v5370_v6  ;;  %1920 = vmatpush1.bf16.msra.mxu1 %v5371_v7  ;;  %v5386_v17 = vld [vmem:[#allocation5 + $0x8c] ss:$16 sps:$4 sm:$0xff]   ;;  %v5388_v18 = vld [vmem:[#allocation5 + $0x80] ss:$16 sps:$4 sm:$0xff]   ;;  %v5389_v19 = vld [vmem:[#allocation5 + $0x88] ss:$16 sps:$4 sm:$0xff]  }
  0x51   :  { %1629 = vmatprep.subr.bf16.mxu0 %v5372_v8  ;;  %1921 = vmatprep.subr.bf16.mxu1 %v5374_v9  ;;  %v5390_v20 = vld [vmem:[#allocation5 + $0xa4] ss:$16 sps:$4 sm:$0xff]   ;;  %v5392_v21 = vld [vmem:[#allocation5 + $0xac] ss:$16 sps:$4 sm:$0xff]   ;;  %v5394_v22 = vld [vmem:[#allocation5 + $0xa0] ss:$16 sps:$4 sm:$0xff]  }
  0x52   :  { %v5395_v23 = vld [vmem:[#allocation5 + $0xa8] ss:$16 sps:$4 sm:$0xff]   ;;  %v5396_v24 = vld [vmem:[#allocation5 + $0xc4] ss:$16 sps:$4 sm:$0xff]   ;;  %v5398_v25 = vld [vmem:[#allocation5 + $0xcc] ss:$16 sps:$4 sm:$0xff]  }
  0x53   :  { %v5400_v26 = vld [vmem:[#allocation5 + $0xc0] ss:$16 sps:$4 sm:$0xff]   ;;  %v5401_v27 = vld [vmem:[#allocation5 + $0xc8] ss:$16 sps:$4 sm:$0xff]   ;;  %v5402_v28 = vld [vmem:[#allocation5 + $0xe4] ss:$16 sps:$4 sm:$0xff]  }
  0x54   :  { %1630 = vmatpush1.bf16.msra.mxu0 %v5376_v10  ;;  %1922 = vmatpush1.bf16.msra.mxu1 %v5377_v11  ;;  %v5404_v29 = vld [vmem:[#allocation5 + $0xec] ss:$16 sps:$4 sm:$0xff]   ;;  %v5406_v30 = vld [vmem:[#allocation5 + $0xe0] ss:$16 sps:$4 sm:$0xff]   ;;  %v5407_v31 = vld [vmem:[#allocation5 + $0xe8] ss:$16 sps:$4 sm:$0xff]  }
  0x55   :  { %1631 = vmatprep.subr.bf16.mxu0 %v5378_v12  ;;  %1923 = vmatprep.subr.bf16.mxu1 %v5380_v13  ;;  %v5408_v32 = vld [vmem:[#allocation5 + $0x104] ss:$16 sps:$4 sm:$0xff]   ;;  %v5410_v33 = vld [vmem:[#allocation5 + $0x10c] ss:$16 sps:$4 sm:$0xff]   ;;  %v5412_v34 = vld [vmem:[#allocation5 + $0x100] ss:$16 sps:$4 sm:$0xff]  }
  0x56   :  { %v5413_v35 = vld [vmem:[#allocation5 + $0x108] ss:$16 sps:$4 sm:$0xff]   ;;  %v5414_v36 = vld [vmem:[#allocation5 + $0x124] ss:$16 sps:$4 sm:$0xff]   ;;  %v5416_v37 = vld [vmem:[#allocation5 + $0x12c] ss:$16 sps:$4 sm:$0xff]  }
  0x57   :  { %v5418_v38 = vld [vmem:[#allocation5 + $0x120] ss:$16 sps:$4 sm:$0xff]   ;;  %v5419_v39 = vld [vmem:[#allocation5 + $0x128] ss:$16 sps:$4 sm:$0xff]   ;;  %v5420_v40 = vld [vmem:[#allocation5 + $0x144] ss:$16 sps:$4 sm:$0xff]  }
  0x58   :  { %1632 = vmatpush1.bf16.msra.mxu0 %v5382_v14  ;;  %1924 = vmatpush1.bf16.msra.mxu1 %v5383_v15  ;;  %v5422_v41 = vld [vmem:[#allocation5 + $0x14c] ss:$16 sps:$4 sm:$0xff]   ;;  %v5424_v42 = vld [vmem:[#allocation5 + $0x140] ss:$16 sps:$4 sm:$0xff]   ;;  %v5425_v43 = vld [vmem:[#allocation5 + $0x148] ss:$16 sps:$4 sm:$0xff]  }
  0x59   :  { %1633 = vmatprep.subr.bf16.mxu0 %v5384_v16  ;;  %1925 = vmatprep.subr.bf16.mxu1 %v5386_v17  ;;  %v5426_v44 = vld [vmem:[#allocation5 + $0x164] ss:$16 sps:$4 sm:$0xff]   ;;  %v5428_v45 = vld [vmem:[#allocation5 + $0x16c] ss:$16 sps:$4 sm:$0xff]   ;;  %v5430_v46 = vld [vmem:[#allocation5 + $0x160] ss:$16 sps:$4 sm:$0xff]  }
  0x5a   :  { %v5431_v47 = vld [vmem:[#allocation5 + $0x168] ss:$16 sps:$4 sm:$0xff]   ;;  %v5458_v48 = vld [vmem:[#allocation2 + $0x4] ss:$28 sps:$4 sm:$0xff]   ;;  %v5434_v50 = vld [vmem:[#allocation5 + $0x18c] ss:$16 sps:$4 sm:$0xff]  }
  0x5b   :  { %v5432_v49 = vld [vmem:[#allocation5 + $0x184] ss:$16 sps:$4 sm:$0xff]   ;;  %1657 = vmatprep.mubr.bf16.mxu0 %v5458_v48  ;;  %1949 = vmatprep.mubr.bf16.mxu1 %v5458_v48  ;;  %v5436_v51 = vld [vmem:[#allocation5 + $0x180] ss:$16 sps:$4 sm:$0xff]   ;;  %v5437_v52 = vld [vmem:[#allocation5 + $0x188] ss:$16 sps:$4 sm:$0xff]  }
  0x5c   :  { %1634 = vmatpush1.bf16.msra.mxu0 %v5388_v18  ;;  %1926 = vmatpush1.bf16.msra.mxu1 %v5389_v19  ;;  %v5438_v53 = vld [vmem:[#allocation5 + $0x1a4] ss:$16 sps:$4 sm:$0xff]   ;;  %v5440_v54 = vld [vmem:[#allocation5 + $0x1ac] ss:$16 sps:$4 sm:$0xff]   ;;  %v5442_v55 = vld [vmem:[#allocation5 + $0x1a0] ss:$16 sps:$4 sm:$0xff]  }
  0x5d   :  { %1635 = vmatprep.subr.bf16.mxu0 %v5390_v20  ;;  %1927 = vmatprep.subr.bf16.mxu1 %v5392_v21  ;;  %v5443_v56 = vld [vmem:[#allocation5 + $0x1a8] ss:$16 sps:$4 sm:$0xff]   ;;  %v5444_v57 = vld [vmem:[#allocation5 + $0x1c4] ss:$16 sps:$4 sm:$0xff]   ;;  %v5446_v58 = vld [vmem:[#allocation5 + $0x1cc] ss:$16 sps:$4 sm:$0xff]  }
  0x5e   :  { %v5448_v59 = vld [vmem:[#allocation5 + $0x1c0] ss:$16 sps:$4 sm:$0xff]   ;;  %v5449_v60 = vld [vmem:[#allocation5 + $0x1c8] ss:$16 sps:$4 sm:$0xff]   ;;  %v5450_v61 = vld [vmem:[#allocation5 + $0x1e4] ss:$16 sps:$4 sm:$0xff]  }
  0x5f   :  { %v5452_v62 = vld [vmem:[#allocation5 + $0x1ec] ss:$16 sps:$4 sm:$0xff]   ;;  %v5454_v63 = vld [vmem:[#allocation5 + $0x1e0] ss:$16 sps:$4 sm:$0xff]   ;;  %v5455_v0 = vld [vmem:[#allocation5 + $0x1e8] ss:$16 sps:$4 sm:$0xff]  }
  0x60   :  { %1636 = vmatpush1.bf16.msra.mxu0 %v5394_v22  ;;  %1928 = vmatpush1.bf16.msra.mxu1 %v5395_v23  ;;  %v5461_v1 = vld [vmem:[#allocation5 + $0x204] ss:$16 sps:$4 sm:$0xff]   ;;  %v5464_v2 = vld [vmem:[#allocation5 + $0x20c] ss:$16 sps:$4 sm:$0xff]   ;;  %v5459_v4 = vld [vmem:[#allocation5 + $0x200] ss:$16 sps:$4 sm:$0xff]  }
  0x61   :  { %1637 = vmatprep.subr.bf16.mxu0 %v5396_v24  ;;  %1929 = vmatprep.subr.bf16.mxu1 %v5398_v25  ;;  %v5456_v3 = vld [vmem:[#allocation2] ss:$28 sps:$4 sm:$0xff]   ;;  %v5462_v5 = vld [vmem:[#allocation5 + $0x208] ss:$16 sps:$4 sm:$0xff]   ;;  %v5467_v6 = vld [vmem:[#allocation5 + $0x224] ss:$16 sps:$4 sm:$0xff]  }
  0x62   :  { %v5470_v7 = vld [vmem:[#allocation5 + $0x22c] ss:$16 sps:$4 sm:$0xff]   ;;  %v5465_v8 = vld [vmem:[#allocation5 + $0x220] ss:$16 sps:$4 sm:$0xff]   ;;  %v5468_v9 = vld [vmem:[#allocation5 + $0x228] ss:$16 sps:$4 sm:$0xff]  }
  0x63   :  { %v5473_v10 = vld [vmem:[#allocation5 + $0x244] ss:$16 sps:$4 sm:$0xff]   ;;  %v5476_v11 = vld [vmem:[#allocation5 + $0x24c] ss:$16 sps:$4 sm:$0xff]   ;;  %v5471_v12 = vld [vmem:[#allocation5 + $0x240] ss:$16 sps:$4 sm:$0xff]  }
  0x64   :  { %1638 = vmatpush1.bf16.msra.mxu0 %v5400_v26  ;;  %1930 = vmatpush1.bf16.msra.mxu1 %v5401_v27  ;;  %v5519_v13 = vld [vmem:[#allocation2 + $0x3c] ss:$28 sps:$4 sm:$0xff]   ;;  %v5479_v15 = vld [vmem:[#allocation5 + $0x264] ss:$16 sps:$4 sm:$0xff]   ;;  %v5477_v18 = vld [vmem:[#allocation5 + $0x260] ss:$16 sps:$4 sm:$0xff]  }
  0x65   :  { %1639 = vmatprep.subr.bf16.mxu0 %v5402_v28  ;;  %1931 = vmatprep.subr.bf16.mxu1 %v5404_v29  ;;  %v5474_v14 = vld [vmem:[#allocation5 + $0x248] ss:$16 sps:$4 sm:$0xff]   ;;  %v5482_v16 = vld [vmem:[#allocation5 + $0x26c] ss:$16 sps:$4 sm:$0xff]   ;;  %v5485_v20 = vld [vmem:[#allocation5 + $0x284] ss:$16 sps:$4 sm:$0xff]  }
  0x66   :  { %v5527_v17 = vld [vmem:[#allocation2 + $0x38] ss:$28 sps:$4 sm:$0xff]   ;;  %v5488_v21 = vld [vmem:[#allocation5 + $0x28c] ss:$16 sps:$4 sm:$0xff]   ;;  %v5483_v23 = vld [vmem:[#allocation5 + $0x280] ss:$16 sps:$4 sm:$0xff]  }
  0x67   :  { %v5480_v19 = vld [vmem:[#allocation5 + $0x268] ss:$16 sps:$4 sm:$0xff]   ;;  %v5534_v22 = vld [vmem:[#allocation2 + $0x74] ss:$28 sps:$4 sm:$0xff]   ;;  %v5494_v26 = vld [vmem:[#allocation5 + $0x2ac] ss:$16 sps:$4 sm:$0xff]  }
  0x68   :  { %1640 = vmatpush1.bf16.msra.mxu0 %v5406_v30  ;;  %1932 = vmatpush1.bf16.msra.mxu1 %v5407_v31  ;;  %v5486_v24 = vld [vmem:[#allocation5 + $0x288] ss:$16 sps:$4 sm:$0xff]   ;;  %v5491_v25 = vld [vmem:[#allocation5 + $0x2a4] ss:$16 sps:$4 sm:$0xff]   ;;  %v5489_v27 = vld [vmem:[#allocation5 + $0x2a0] ss:$16 sps:$4 sm:$0xff]  }
  0x69   :  { %1641 = vmatprep.subr.bf16.mxu0 %v5408_v32  ;;  %1933 = vmatprep.subr.bf16.mxu1 %v5410_v33  ;;  %v5542_v28 = vld [vmem:[#allocation2 + $0x70] ss:$28 sps:$4 sm:$0xff]   ;;  %v5492_v29 = vld [vmem:[#allocation5 + $0x2a8] ss:$16 sps:$4 sm:$0xff]   ;;  %v5497_v30 = vld [vmem:[#allocation5 + $0x2c4] ss:$16 sps:$4 sm:$0xff]  }
  0x6a   :  { %v5549_v31 = vld [vmem:[#allocation2 + $0xac] ss:$28 sps:$4 sm:$0xff]   ;;  %v5495_v33 = vld [vmem:[#allocation5 + $0x2c0] ss:$16 sps:$4 sm:$0xff]  }
  0x6b   :  { %v5500_v32 = vld [vmem:[#allocation5 + $0x2cc] ss:$16 sps:$4 sm:$0xff]   ;;  %v5516_v48 = vld [vmem:[#allocation5 + $0x328] ss:$16 sps:$4 sm:$0xff]  }
  0x6c   :  { %1642 = vmatpush1.bf16.msra.mxu0 %v5412_v34  ;;  %1934 = vmatpush1.bf16.msra.mxu1 %v5413_v35  ;;  %v5498_v34 = vld [vmem:[#allocation5 + $0x2c8] ss:$16 sps:$4 sm:$0xff]   ;;  %v5503_v35 = vld [vmem:[#allocation5 + $0x2e4] ss:$16 sps:$4 sm:$0xff]  }
  0x6d   :  { %1643 = vmatprep.subr.bf16.mxu0 %v5414_v36  ;;  %1935 = vmatprep.subr.bf16.mxu1 %v5416_v37  ;;  %v5506_v36 = vld [vmem:[#allocation5 + $0x2ec] ss:$16 sps:$4 sm:$0xff]   ;;  %v5501_v37 = vld [vmem:[#allocation5 + $0x2e0] ss:$16 sps:$4 sm:$0xff]  }
  0x70   :  { %1644 = vmatpush1.bf16.msra.mxu0 %v5418_v38  ;;  %1936 = vmatpush1.bf16.msra.mxu1 %v5419_v39  ;;  %v5557_v38 = vld [vmem:[#allocation2 + $0xa8] ss:$28 sps:$4 sm:$0xff]  }
  0x71   :  { %1645 = vmatprep.subr.bf16.mxu0 %v5420_v40  ;;  %1937 = vmatprep.subr.bf16.mxu1 %v5422_v41  ;;  %v5504_v39 = vld [vmem:[#allocation5 + $0x2e8] ss:$16 sps:$4 sm:$0xff]   ;;  %v5509_v41 = vld [vmem:[#allocation5 + $0x304] ss:$16 sps:$4 sm:$0xff]  }
  0x72   :  { %v5566_v40 = vld [vmem:[#allocation2 + $0xc] ss:$28 sps:$4 sm:$0xff]  }
  0x74   :  { %1646 = vmatpush1.bf16.msra.mxu0 %v5424_v42  ;;  %1938 = vmatpush1.bf16.msra.mxu1 %v5425_v43  ;;  %v5512_v42 = vld [vmem:[#allocation5 + $0x30c] ss:$16 sps:$4 sm:$0xff]   ;;  %v5507_v43 = vld [vmem:[#allocation5 + $0x300] ss:$16 sps:$4 sm:$0xff]  }
  0x75   :  { %1647 = vmatprep.subr.bf16.mxu0 %v5426_v44  ;;  %1939 = vmatprep.subr.bf16.mxu1 %v5428_v45  ;;  %v5510_v44 = vld [vmem:[#allocation5 + $0x308] ss:$16 sps:$4 sm:$0xff]   ;;  %v5515_v45 = vld [vmem:[#allocation5 + $0x324] ss:$16 sps:$4 sm:$0xff]  }
  0x78   :  { %1648 = vmatpush1.bf16.msra.mxu0 %v5430_v46  ;;  %1940 = vmatpush1.bf16.msra.mxu1 %v5431_v47  ;;  %v5518_v46 = vld [vmem:[#allocation5 + $0x32c] ss:$16 sps:$4 sm:$0xff]   ;;  %v5513_v47 = vld [vmem:[#allocation5 + $0x320] ss:$16 sps:$4 sm:$0xff]  }
  0x79   :  { %1649 = vmatprep.subr.bf16.mxu0 %v5432_v49  ;;  %1941 = vmatprep.subr.bf16.mxu1 %v5434_v50  ;;  %v5523_v49 = vld [vmem:[#allocation5 + $0x344] ss:$16 sps:$4 sm:$0xff]   ;;  %v5526_v50 = vld [vmem:[#allocation5 + $0x34c] ss:$16 sps:$4 sm:$0xff]  }
  0x7c   :  { %1650 = vmatpush1.bf16.msra.mxu0 %v5436_v51  ;;  %1942 = vmatpush1.bf16.msra.mxu1 %v5437_v52  ;;  %v5521_v51 = vld [vmem:[#allocation5 + $0x340] ss:$16 sps:$4 sm:$0xff]   ;;  %v5524_v52 = vld [vmem:[#allocation5 + $0x348] ss:$16 sps:$4 sm:$0xff]  }
  0x7d   :  { %1651 = vmatprep.subr.bf16.mxu0 %v5438_v53  ;;  %1943 = vmatprep.subr.bf16.mxu1 %v5440_v54  ;;  %v5530_v53 = vld [vmem:[#allocation5 + $0x364] ss:$16 sps:$4 sm:$0xff]   ;;  %v5533_v54 = vld [vmem:[#allocation5 + $0x36c] ss:$16 sps:$4 sm:$0xff]  }
  0x80   :  { %1652 = vmatpush1.bf16.msra.mxu0 %v5442_v55  ;;  %1944 = vmatpush1.bf16.msra.mxu1 %v5443_v56  ;;  %v5528_v55 = vld [vmem:[#allocation5 + $0x360] ss:$16 sps:$4 sm:$0xff]   ;;  %v5531_v56 = vld [vmem:[#allocation5 + $0x368] ss:$16 sps:$4 sm:$0xff]  }
  0x81   :  { %1653 = vmatprep.subr.bf16.mxu0 %v5444_v57  ;;  %1945 = vmatprep.subr.bf16.mxu1 %v5446_v58  ;;  %v5538_v57 = vld [vmem:[#allocation5 + $0x384] ss:$16 sps:$4 sm:$0xff]   ;;  %v5541_v58 = vld [vmem:[#allocation5 + $0x38c] ss:$16 sps:$4 sm:$0xff]  }
  0x84   :  { %1654 = vmatpush1.bf16.msra.mxu0 %v5448_v59  ;;  %1946 = vmatpush1.bf16.msra.mxu1 %v5449_v60  ;;  %v5536_v59 = vld [vmem:[#allocation5 + $0x380] ss:$16 sps:$4 sm:$0xff]   ;;  %v5539_v60 = vld [vmem:[#allocation5 + $0x388] ss:$16 sps:$4 sm:$0xff]  }
  0x85   :  { %1655 = vmatprep.subr.bf16.mxu0 %v5450_v61  ;;  %1947 = vmatprep.subr.bf16.mxu1 %v5452_v62  ;;  %v5545_v61 = vld [vmem:[#allocation5 + $0x3a4] ss:$16 sps:$4 sm:$0xff]   ;;  %v5548_v62 = vld [vmem:[#allocation5 + $0x3ac] ss:$16 sps:$4 sm:$0xff]  }
  0x88   :  { %1656 = vmatpush1.bf16.msra.mxu0 %v5454_v63  ;;  %1948 = vmatpush1.bf16.msra.mxu1 %v5455_v0  ;;  %v5543_v63 = vld [vmem:[#allocation5 + $0x3a0] ss:$16 sps:$4 sm:$0xff]   ;;  %v5546_v0 = vld [vmem:[#allocation5 + $0x3a8] ss:$16 sps:$4 sm:$0xff]  }
  0x89   :  { %1698 = vmatprep.subr.bf16.mxu0 %v5461_v1  ;;  %1990 = vmatprep.subr.bf16.mxu1 %v5464_v2  ;;  %v5553_v1 = vld [vmem:[#allocation5 + $0x3c4] ss:$16 sps:$4 sm:$0xff]   ;;  %v5556_v2 = vld [vmem:[#allocation5 + $0x3cc] ss:$16 sps:$4 sm:$0xff]  }
  0x8b   :  { %1658 = vmatmul.mubr.bf16.vlgmr.msra.gmra.mrb[0].mxu0 %v5456_v3  ;;  %1950 = vmatmul.mubr.bf16.vlgmr.msra.gmra.mrb[0].mxu1 %v5456_v3  ;;  %v5551_v3 = vld [vmem:[#allocation5 + $0x3c0] ss:$16 sps:$4 sm:$0xff]  }
  0x8c   :  { %1699 = vmatpush1.bf16.msra.mxu0 %v5459_v4  ;;  %1991 = vmatpush1.bf16.msra.mxu1 %v5462_v5  ;;  %v5554_v4 = vld [vmem:[#allocation5 + $0x3c8] ss:$16 sps:$4 sm:$0xff]   ;;  %v5560_v5 = vld [vmem:[#allocation5 + $0x3e4] ss:$16 sps:$4 sm:$0xff]  }
  0x8d   :  { %1700 = vmatprep.subr.bf16.mxu0 %v5467_v6  ;;  %1992 = vmatprep.subr.bf16.mxu1 %v5470_v7  ;;  %v5563_v6 = vld [vmem:[#allocation5 + $0x3ec] ss:$16 sps:$4 sm:$0xff]   ;;  %v5558_v7 = vld [vmem:[#allocation5 + $0x3e0] ss:$16 sps:$4 sm:$0xff]  }
  0x8e   :  { %1667 = vmatprep.mubr.bf16.mxu0 %v5519_v13  ;;  %1959 = vmatprep.mubr.bf16.mxu1 %v5519_v13  ;;  %v5570_v13 = vld [vmem:[#allocation5 + $0x408] ss:$16 sps:$4 sm:$0xff]  }
  0x90   :  { %1701 = vmatpush1.bf16.msra.mxu0 %v5465_v8  ;;  %1993 = vmatpush1.bf16.msra.mxu1 %v5468_v9  ;;  %v5561_v8 = vld [vmem:[#allocation5 + $0x3e8] ss:$16 sps:$4 sm:$0xff]   ;;  %v5569_v9 = vld [vmem:[#allocation5 + $0x404] ss:$16 sps:$4 sm:$0xff]  }
  0x91   :  { %1702 = vmatprep.subr.bf16.mxu0 %v5473_v10  ;;  %1994 = vmatprep.subr.bf16.mxu1 %v5476_v11  ;;  %v5572_v10 = vld [vmem:[#allocation5 + $0x40c] ss:$16 sps:$4 sm:$0xff]   ;;  %v5564_v11 = vld [vmem:[#allocation2 + $0x8] ss:$28 sps:$4 sm:$0xff]  }
  0x93   :  { %1668 = vmatmul.mubr.bf16.gmra.mrb[4].mxu0 %v5527_v17  ;;  %1960 = vmatmul.mubr.bf16.gmra.mrb[4].mxu1 %v5527_v17  ;;  %v5573_v17 = vld [vmem:[#allocation5 + $0x420] ss:$16 sps:$4 sm:$0xff]  }
  0x94   :  { %1703 = vmatpush1.bf16.msra.mxu0 %v5471_v12  ;;  %1995 = vmatpush1.bf16.msra.mxu1 %v5474_v14  ;;  %v5567_v12 = vld [vmem:[#allocation5 + $0x400] ss:$16 sps:$4 sm:$0xff]   ;;  %v5575_v14 = vld [vmem:[#allocation5 + $0x424] ss:$16 sps:$4 sm:$0xff]  }
  0x95   :  { %1704 = vmatprep.subr.bf16.mxu0 %v5479_v15  ;;  %1996 = vmatprep.subr.bf16.mxu1 %v5482_v16  ;;  %v5578_v15 = vld [vmem:[#allocation5 + $0x42c] ss:$16 sps:$4 sm:$0xff]   ;;  %v5627_v16 = vld [vmem:[#allocation2 + $0x44] ss:$28 sps:$4 sm:$0xff]  }
  0x96   :  { %1677 = vmatprep.mubr.bf16.mxu0 %v5534_v22  ;;  %1969 = vmatprep.mubr.bf16.mxu1 %v5534_v22  ;;  %v5582_v22 = vld [vmem:[#allocation5 + $0x448] ss:$16 sps:$4 sm:$0xff]  }
  0x98   :  { %1705 = vmatpush1.bf16.msra.mxu0 %v5477_v18  ;;  %1997 = vmatpush1.bf16.msra.mxu1 %v5480_v19  ;;  %v5576_v18 = vld [vmem:[#allocation5 + $0x428] ss:$16 sps:$4 sm:$0xff]   ;;  %v5581_v19 = vld [vmem:[#allocation5 + $0x444] ss:$16 sps:$4 sm:$0xff]  }
  0x99   :  { %1706 = vmatprep.subr.bf16.mxu0 %v5485_v20  ;;  %1998 = vmatprep.subr.bf16.mxu1 %v5488_v21  ;;  %v5584_v20 = vld [vmem:[#allocation5 + $0x44c] ss:$16 sps:$4 sm:$0xff]   ;;  %v5579_v21 = vld [vmem:[#allocation5 + $0x440] ss:$16 sps:$4 sm:$0xff]  }
  0x9b   :  { %1678 = vmatmul.mubr.bf16.gmra.mrb[8].mxu0 %v5542_v28  ;;  %1970 = vmatmul.mubr.bf16.gmra.mrb[8].mxu1 %v5542_v28  ;;  %v5588_v28 = vld [vmem:[#allocation5 + $0x468] ss:$16 sps:$4 sm:$0xff]  }
  0x9c   :  { %1707 = vmatpush1.bf16.msra.mxu0 %v5483_v23  ;;  %1999 = vmatpush1.bf16.msra.mxu1 %v5486_v24  ;;  %v5629_v23 = vld [vmem:[#allocation2 + $0x40] ss:$28 sps:$4 sm:$0xff]   ;;  %v5587_v24 = vld [vmem:[#allocation5 + $0x464] ss:$16 sps:$4 sm:$0xff]  }
  0x9d   :  { %1708 = vmatprep.subr.bf16.mxu0 %v5491_v25  ;;  %2000 = vmatprep.subr.bf16.mxu1 %v5494_v26  ;;  %v5590_v25 = vld [vmem:[#allocation5 + $0x46c] ss:$16 sps:$4 sm:$0xff]  }
  0x9e   :  { %1687 = vmatprep.mubr.bf16.mxu0 %v5549_v31  ;;  %1979 = vmatprep.mubr.bf16.mxu1 %v5549_v31  ;;  %v5642_v26 = vld [vmem:[#allocation2 + $0x7c] ss:$28 sps:$4 sm:$0xff]   ;;  %v5591_v31 = vld [vmem:[#allocation5 + $0x480] ss:$16 sps:$4 sm:$0xff]  }
  0xa0   :  { %1709 = vmatpush1.bf16.msra.mxu0 %v5489_v27  ;;  %2001 = vmatpush1.bf16.msra.mxu1 %v5492_v29  ;;  %v5585_v27 = vld [vmem:[#allocation5 + $0x460] ss:$16 sps:$4 sm:$0xff]   ;;  %v5593_v29 = vld [vmem:[#allocation5 + $0x484] ss:$16 sps:$4 sm:$0xff]  }
  0xa1   :  { %1710 = vmatprep.subr.bf16.mxu0 %v5497_v30  ;;  %2002 = vmatprep.subr.bf16.mxu1 %v5500_v32  ;;  %v5596_v30 = vld [vmem:[#allocation5 + $0x48c] ss:$16 sps:$4 sm:$0xff]   ;;  %v5594_v32 = vld [vmem:[#allocation5 + $0x488] ss:$16 sps:$4 sm:$0xff]  }
  0xa3   :  { %1688 = vmatmul.mubr.bf16.gmra.mrb[12].mxu0 %v5557_v38  ;;  %1980 = vmatmul.mubr.bf16.gmra.mrb[12].mxu1 %v5557_v38  ;;  %v5600_v38 = vld [vmem:[#allocation5 + $0x4a8] ss:$16 sps:$4 sm:$0xff]  }
  0xa4   :  { %1711 = vmatpush1.bf16.msra.mxu0 %v5495_v33  ;;  %2003 = vmatpush1.bf16.msra.mxu1 %v5498_v34  ;;  %v5644_v33 = vld [vmem:[#allocation2 + $0x78] ss:$28 sps:$4 sm:$0xff]  }
  0xa5   :  { %1712 = vmatprep.subr.bf16.mxu0 %v5503_v35  ;;  %2004 = vmatprep.subr.bf16.mxu1 %v5506_v36  ;;  %v5599_v34 = vld [vmem:[#allocation5 + $0x4a4] ss:$16 sps:$4 sm:$0xff]   ;;  %v5602_v35 = vld [vmem:[#allocation5 + $0x4ac] ss:$16 sps:$4 sm:$0xff]  }
  0xa6   :  { %1730 = vmatprep.mubr.bf16.mxu0 %v5566_v40  ;;  %2022 = vmatprep.mubr.bf16.mxu1 %v5566_v40  ;;  %v5657_v36 = vld [vmem:[#allocation2 + $0xb4] ss:$28 sps:$4 sm:$0xff]   ;;  %v5608_v40 = vld [vmem:[#allocation5 + $0x4cc] ss:$16 sps:$4 sm:$0xff]  }
  0xa8   :  { %1713 = vmatpush1.bf16.msra.mxu0 %v5501_v37  ;;  %2005 = vmatpush1.bf16.msra.mxu1 %v5504_v39  ;;  %v5597_v37 = vld [vmem:[#allocation5 + $0x4a0] ss:$16 sps:$4 sm:$0xff]   ;;  %v5605_v39 = vld [vmem:[#allocation5 + $0x4c4] ss:$16 sps:$4 sm:$0xff]  }
  0xa9   :  { %1714 = vmatprep.subr.bf16.mxu0 %v5509_v41  ;;  %2006 = vmatprep.subr.bf16.mxu1 %v5512_v42  ;;  %v5603_v41 = vld [vmem:[#allocation5 + $0x4c0] ss:$16 sps:$4 sm:$0xff]   ;;  %v5606_v42 = vld [vmem:[#allocation5 + $0x4c8] ss:$16 sps:$4 sm:$0xff]  }
  0xac   :  { %1715 = vmatpush1.bf16.msra.mxu0 %v5507_v43  ;;  %2007 = vmatpush1.bf16.msra.mxu1 %v5510_v44  ;;  %v5659_v43 = vld [vmem:[#allocation2 + $0xb0] ss:$28 sps:$4 sm:$0xff]   ;;  %v5611_v44 = vld [vmem:[#allocation5 + $0x4e4] ss:$16 sps:$4 sm:$0xff]  }
  0xad   :  { %1716 = vmatprep.subr.bf16.mxu0 %v5515_v45  ;;  %2008 = vmatprep.subr.bf16.mxu1 %v5518_v46  ;;  %v5614_v45 = vld [vmem:[#allocation5 + $0x4ec] ss:$16 sps:$4 sm:$0xff]   ;;  %v5674_v46 = vld [vmem:[#allocation2 + $0x14] ss:$28 sps:$4 sm:$0xff]  }
  0xb0   :  { %1717 = vmatpush1.bf16.msra.mxu0 %v5513_v47  ;;  %2009 = vmatpush1.bf16.msra.mxu1 %v5516_v48  ;;  %v5609_v47 = vld [vmem:[#allocation5 + $0x4e0] ss:$16 sps:$4 sm:$0xff]   ;;  %v5612_v48 = vld [vmem:[#allocation5 + $0x4e8] ss:$16 sps:$4 sm:$0xff]  }
  0xb1   :  { %1718 = vmatprep.subr.bf16.mxu0 %v5523_v49  ;;  %2010 = vmatprep.subr.bf16.mxu1 %v5526_v50  ;;  %v5617_v49 = vld [vmem:[#allocation5 + $0x504] ss:$16 sps:$4 sm:$0xff]   ;;  %v5620_v50 = vld [vmem:[#allocation5 + $0x50c] ss:$16 sps:$4 sm:$0xff]  }
  0xb4   :  { %1719 = vmatpush1.bf16.msra.mxu0 %v5521_v51  ;;  %2011 = vmatpush1.bf16.msra.mxu1 %v5524_v52  ;;  %v5615_v51 = vld [vmem:[#allocation5 + $0x500] ss:$16 sps:$4 sm:$0xff]   ;;  %v5618_v52 = vld [vmem:[#allocation5 + $0x508] ss:$16 sps:$4 sm:$0xff]  }
  0xb5   :  { %1720 = vmatprep.subr.bf16.mxu0 %v5530_v53  ;;  %2012 = vmatprep.subr.bf16.mxu1 %v5533_v54  ;;  %v5623_v53 = vld [vmem:[#allocation5 + $0x524] ss:$16 sps:$4 sm:$0xff]   ;;  %v5626_v54 = vld [vmem:[#allocation5 + $0x52c] ss:$16 sps:$4 sm:$0xff]  }
  0xb8   :  { %1721 = vmatpush1.bf16.msra.mxu0 %v5528_v55  ;;  %2013 = vmatpush1.bf16.msra.mxu1 %v5531_v56  ;;  %v5621_v55 = vld [vmem:[#allocation5 + $0x520] ss:$16 sps:$4 sm:$0xff]   ;;  %v5624_v56 = vld [vmem:[#allocation5 + $0x528] ss:$16 sps:$4 sm:$0xff]  }
  0xb9   :  { %1722 = vmatprep.subr.bf16.mxu0 %v5538_v57  ;;  %2014 = vmatprep.subr.bf16.mxu1 %v5541_v58  ;;  %v5632_v57 = vld [vmem:[#allocation5 + $0x544] ss:$16 sps:$4 sm:$0xff]   ;;  %v5635_v58 = vld [vmem:[#allocation5 + $0x54c] ss:$16 sps:$4 sm:$0xff]  }
  0xbc   :  { %1723 = vmatpush1.bf16.msra.mxu0 %v5536_v59  ;;  %2015 = vmatpush1.bf16.msra.mxu1 %v5539_v60  ;;  %v5630_v59 = vld [vmem:[#allocation5 + $0x540] ss:$16 sps:$4 sm:$0xff]   ;;  %v5633_v60 = vld [vmem:[#allocation5 + $0x548] ss:$16 sps:$4 sm:$0xff]  }
  0xbd   :  { %1724 = vmatprep.subr.bf16.mxu0 %v5545_v61  ;;  %2016 = vmatprep.subr.bf16.mxu1 %v5548_v62  ;;  %v5638_v61 = vld [vmem:[#allocation5 + $0x564] ss:$16 sps:$4 sm:$0xff]   ;;  %v5641_v62 = vld [vmem:[#allocation5 + $0x56c] ss:$16 sps:$4 sm:$0xff]  }
  0xc0   :  { %1725 = vmatpush1.bf16.msra.mxu0 %v5543_v63  ;;  %2017 = vmatpush1.bf16.msra.mxu1 %v5546_v0  ;;  %v5636_v63 = vld [vmem:[#allocation5 + $0x560] ss:$16 sps:$4 sm:$0xff]   ;;  %v5639_v0 = vld [vmem:[#allocation5 + $0x568] ss:$16 sps:$4 sm:$0xff]  }
  0xc1   :  { %1726 = vmatprep.subr.bf16.mxu0 %v5553_v1  ;;  %2018 = vmatprep.subr.bf16.mxu1 %v5556_v2  ;;  %v5647_v1 = vld [vmem:[#allocation5 + $0x584] ss:$16 sps:$4 sm:$0xff]   ;;  %v5650_v2 = vld [vmem:[#allocation5 + $0x58c] ss:$16 sps:$4 sm:$0xff]  }
  0xc4   :  { %1727 = vmatpush1.bf16.msra.mxu0 %v5551_v3  ;;  %2019 = vmatpush1.bf16.msra.mxu1 %v5554_v4  ;;  %v5645_v3 = vld [vmem:[#allocation5 + $0x580] ss:$16 sps:$4 sm:$0xff]   ;;  %v5648_v4 = vld [vmem:[#allocation5 + $0x588] ss:$16 sps:$4 sm:$0xff]  }
  0xc5   :  { %1728 = vmatprep.subr.bf16.mxu0 %v5560_v5  ;;  %2020 = vmatprep.subr.bf16.mxu1 %v5563_v6  ;;  %v5653_v5 = vld [vmem:[#allocation5 + $0x5a4] ss:$16 sps:$4 sm:$0xff]   ;;  %v5656_v6 = vld [vmem:[#allocation5 + $0x5ac] ss:$16 sps:$4 sm:$0xff]  }
  0xc8   :  { %1729 = vmatpush1.bf16.msra.mxu0 %v5558_v7  ;;  %2021 = vmatpush1.bf16.msra.mxu1 %v5561_v8  ;;  %v5651_v7 = vld [vmem:[#allocation5 + $0x5a0] ss:$16 sps:$4 sm:$0xff]   ;;  %v5654_v8 = vld [vmem:[#allocation5 + $0x5a8] ss:$16 sps:$4 sm:$0xff]  }
  0xc9   :  { %1771 = vmatprep.subr.bf16.mxu0 %v5569_v9  ;;  %2063 = vmatprep.subr.bf16.mxu1 %v5572_v10  ;;  %v5662_v9 = vld [vmem:[#allocation5 + $0x5c4] ss:$16 sps:$4 sm:$0xff]   ;;  %v5665_v10 = vld [vmem:[#allocation5 + $0x5cc] ss:$16 sps:$4 sm:$0xff]  }
  0xcb   :  { %1731 = vmatmul.mubr.bf16.vlgmr.msra.gmra.mrb[0].mxu0 %v5564_v11  ;;  %2023 = vmatmul.mubr.bf16.vlgmr.msra.gmra.mrb[0].mxu1 %v5564_v11  ;;  %v5660_v11 = vld [vmem:[#allocation5 + $0x5c0] ss:$16 sps:$4 sm:$0xff]  }
  0xcc   :  { %1772 = vmatpush1.bf16.msra.mxu0 %v5567_v12  ;;  %2064 = vmatpush1.bf16.msra.mxu1 %v5570_v13  ;;  %v5663_v12 = vld [vmem:[#allocation5 + $0x5c8] ss:$16 sps:$4 sm:$0xff]   ;;  %v5668_v13 = vld [vmem:[#allocation5 + $0x5e4] ss:$16 sps:$4 sm:$0xff]  }
  0xcd   :  { %1773 = vmatprep.subr.bf16.mxu0 %v5575_v14  ;;  %2065 = vmatprep.subr.bf16.mxu1 %v5578_v15  ;;  %v5671_v14 = vld [vmem:[#allocation5 + $0x5ec] ss:$16 sps:$4 sm:$0xff]   ;;  %v5666_v15 = vld [vmem:[#allocation5 + $0x5e0] ss:$16 sps:$4 sm:$0xff]  }
  0xce   :  { %1740 = vmatprep.mubr.bf16.mxu0 %v5627_v16  ;;  %2032 = vmatprep.mubr.bf16.mxu1 %v5627_v16  ;;  %v5669_v16 = vld [vmem:[#allocation5 + $0x5e8] ss:$16 sps:$4 sm:$0xff]  }
  0xd0   :  { %1774 = vmatpush1.bf16.msra.mxu0 %v5573_v17  ;;  %2066 = vmatpush1.bf16.msra.mxu1 %v5576_v18  ;;  %v5677_v17 = vld [vmem:[#allocation5 + $0x604] ss:$16 sps:$4 sm:$0xff]   ;;  %v5680_v18 = vld [vmem:[#allocation5 + $0x60c] ss:$16 sps:$4 sm:$0xff]  }
  0xd1   :  { %1775 = vmatprep.subr.bf16.mxu0 %v5581_v19  ;;  %2067 = vmatprep.subr.bf16.mxu1 %v5584_v20  ;;  %v5672_v19 = vld [vmem:[#allocation2 + $0x10] ss:$28 sps:$4 sm:$0xff]  }
  0xd2   :  { %v5675_v20 = vld [vmem:[#allocation5 + $0x600] ss:$16 sps:$4 sm:$0xff]  }
  0xd3   :  { %1741 = vmatmul.mubr.bf16.gmra.mrb[4].mxu0 %v5629_v23  ;;  %2033 = vmatmul.mubr.bf16.gmra.mrb[4].mxu1 %v5629_v23  ;;  %v5686_v23 = vld [vmem:[#allocation5 + $0x62c] ss:$16 sps:$4 sm:$0xff]  }
  0xd4   :  { %1776 = vmatpush1.bf16.msra.mxu0 %v5579_v21  ;;  %2068 = vmatpush1.bf16.msra.mxu1 %v5582_v22  ;;  %v5678_v21 = vld [vmem:[#allocation5 + $0x608] ss:$16 sps:$4 sm:$0xff]   ;;  %v5683_v22 = vld [vmem:[#allocation5 + $0x624] ss:$16 sps:$4 sm:$0xff]  }
  0xd5   :  { %1777 = vmatprep.subr.bf16.mxu0 %v5587_v24  ;;  %2069 = vmatprep.subr.bf16.mxu1 %v5590_v25  ;;  %v5687_v24 = vld [vmem:[#allocation2 + $0x4c] ss:$28 sps:$4 sm:$0xff]   ;;  %v5681_v25 = vld [vmem:[#allocation5 + $0x620] ss:$16 sps:$4 sm:$0xff]  }
  0xd6   :  { %1750 = vmatprep.mubr.bf16.mxu0 %v5642_v26  ;;  %2042 = vmatprep.mubr.bf16.mxu1 %v5642_v26  ;;  %v5684_v26 = vld [vmem:[#allocation5 + $0x628] ss:$16 sps:$4 sm:$0xff]  }
  0xd8   :  { %1778 = vmatpush1.bf16.msra.mxu0 %v5585_v27  ;;  %2070 = vmatpush1.bf16.msra.mxu1 %v5588_v28  ;;  %v5692_v27 = vld [vmem:[#allocation5 + $0x644] ss:$16 sps:$4 sm:$0xff]   ;;  %v5695_v28 = vld [vmem:[#allocation5 + $0x64c] ss:$16 sps:$4 sm:$0xff]  }
  0xd9   :  { %1779 = vmatprep.subr.bf16.mxu0 %v5593_v29  ;;  %2071 = vmatprep.subr.bf16.mxu1 %v5596_v30  ;;  %v5689_v29 = vld [vmem:[#allocation2 + $0x48] ss:$28 sps:$4 sm:$0xff]   ;;  %v5690_v30 = vld [vmem:[#allocation5 + $0x640] ss:$16 sps:$4 sm:$0xff]  }
  0xdb   :  { %1751 = vmatmul.mubr.bf16.gmra.mrb[8].mxu0 %v5644_v33  ;;  %2043 = vmatmul.mubr.bf16.gmra.mrb[8].mxu1 %v5644_v33  ;;  %v5701_v33 = vld [vmem:[#allocation5 + $0x66c] ss:$16 sps:$4 sm:$0xff]  }
  0xdc   :  { %1780 = vmatpush1.bf16.msra.mxu0 %v5591_v31  ;;  %2072 = vmatpush1.bf16.msra.mxu1 %v5594_v32  ;;  %v5693_v31 = vld [vmem:[#allocation5 + $0x648] ss:$16 sps:$4 sm:$0xff]   ;;  %v5698_v32 = vld [vmem:[#allocation5 + $0x664] ss:$16 sps:$4 sm:$0xff]  }
  0xdd   :  { %1781 = vmatprep.subr.bf16.mxu0 %v5599_v34  ;;  %2073 = vmatprep.subr.bf16.mxu1 %v5602_v35  ;;  %v5696_v34 = vld [vmem:[#allocation5 + $0x660] ss:$16 sps:$4 sm:$0xff]  }
  0xde   :  { %1760 = vmatprep.mubr.bf16.mxu0 %v5657_v36  ;;  %2052 = vmatprep.mubr.bf16.mxu1 %v5657_v36  ;;  %v5702_v35 = vld [vmem:[#allocation2 + $0x84] ss:$28 sps:$4 sm:$0xff]   ;;  %v5699_v36 = vld [vmem:[#allocation5 + $0x668] ss:$16 sps:$4 sm:$0xff]  }
  0xe0   :  { %1782 = vmatpush1.bf16.msra.mxu0 %v5597_v37  ;;  %2074 = vmatpush1.bf16.msra.mxu1 %v5600_v38  ;;  %v5707_v37 = vld [vmem:[#allocation5 + $0x684] ss:$16 sps:$4 sm:$0xff]   ;;  %v5710_v38 = vld [vmem:[#allocation5 + $0x68c] ss:$16 sps:$4 sm:$0xff]  }
  0xe1   :  { %1783 = vmatprep.subr.bf16.mxu0 %v5605_v39  ;;  %2075 = vmatprep.subr.bf16.mxu1 %v5608_v40  ;;  %v5704_v39 = vld [vmem:[#allocation2 + $0x80] ss:$28 sps:$4 sm:$0xff]  }
  0xe2   :  { %v5705_v40 = vld [vmem:[#allocation5 + $0x680] ss:$16 sps:$4 sm:$0xff]  }
  0xe3   :  { %1761 = vmatmul.mubr.bf16.gmra.mrb[12].mxu0 %v5659_v43  ;;  %2053 = vmatmul.mubr.bf16.gmra.mrb[12].mxu1 %v5659_v43  ;;  %v5716_v43 = vld [vmem:[#allocation5 + $0x6ac] ss:$16 sps:$4 sm:$0xff]  }
  0xe4   :  { %1784 = vmatpush1.bf16.msra.mxu0 %v5603_v41  ;;  %2076 = vmatpush1.bf16.msra.mxu1 %v5606_v42  ;;  %v5708_v41 = vld [vmem:[#allocation5 + $0x688] ss:$16 sps:$4 sm:$0xff]   ;;  %v5713_v42 = vld [vmem:[#allocation5 + $0x6a4] ss:$16 sps:$4 sm:$0xff]  }
  0xe5   :  { %1785 = vmatprep.subr.bf16.mxu0 %v5611_v44  ;;  %2077 = vmatprep.subr.bf16.mxu1 %v5614_v45  ;;  %v5717_v44 = vld [vmem:[#allocation2 + $0xbc] ss:$28 sps:$4 sm:$0xff]   ;;  %v5711_v45 = vld [vmem:[#allocation5 + $0x6a0] ss:$16 sps:$4 sm:$0xff]  }
  0xe6   :  { %1803 = vmatprep.mubr.bf16.mxu0 %v5674_v46  ;;  %2095 = vmatprep.mubr.bf16.mxu1 %v5674_v46  ;;  %v5714_v46 = vld [vmem:[#allocation5 + $0x6a8] ss:$16 sps:$4 sm:$0xff]  }
  0xe8   :  { %1786 = vmatpush1.bf16.msra.mxu0 %v5609_v47  ;;  %2078 = vmatpush1.bf16.msra.mxu1 %v5612_v48  ;;  %v5722_v47 = vld [vmem:[#allocation5 + $0x6c4] ss:$16 sps:$4 sm:$0xff]   ;;  %v5725_v48 = vld [vmem:[#allocation5 + $0x6cc] ss:$16 sps:$4 sm:$0xff]  }
  0xe9   :  { %1787 = vmatprep.subr.bf16.mxu0 %v5617_v49  ;;  %2079 = vmatprep.subr.bf16.mxu1 %v5620_v50  ;;  %v5719_v49 = vld [vmem:[#allocation2 + $0xb8] ss:$28 sps:$4 sm:$0xff]   ;;  %v5720_v50 = vld [vmem:[#allocation5 + $0x6c0] ss:$16 sps:$4 sm:$0xff]  }
  0xec   :  { %1788 = vmatpush1.bf16.msra.mxu0 %v5615_v51  ;;  %2080 = vmatpush1.bf16.msra.mxu1 %v5618_v52  ;;  %v5723_v51 = vld [vmem:[#allocation5 + $0x6c8] ss:$16 sps:$4 sm:$0xff]   ;;  %v5728_v52 = vld [vmem:[#allocation5 + $0x6e4] ss:$16 sps:$4 sm:$0xff]  }
  0xed   :  { %1789 = vmatprep.subr.bf16.mxu0 %v5623_v53  ;;  %2081 = vmatprep.subr.bf16.mxu1 %v5626_v54  ;;  %v5731_v53 = vld [vmem:[#allocation5 + $0x6ec] ss:$16 sps:$4 sm:$0xff]   ;;  %v5726_v54 = vld [vmem:[#allocation5 + $0x6e0] ss:$16 sps:$4 sm:$0xff]  }
  0xf0   :  { %1790 = vmatpush1.bf16.msra.mxu0 %v5621_v55  ;;  %2082 = vmatpush1.bf16.msra.mxu1 %v5624_v56  ;;  %v5729_v55 = vld [vmem:[#allocation5 + $0x6e8] ss:$16 sps:$4 sm:$0xff]   ;;  %v5738_v56 = vld [vmem:[#allocation7 + $0x4] ss:$16 sps:$4 sm:$0xff]  }
  0xf1   :  { %1791 = vmatprep.subr.bf16.mxu0 %v5632_v57  ;;  %2083 = vmatprep.subr.bf16.mxu1 %v5635_v58  ;;  %v5741_v57 = vld [vmem:[#allocation7 + $0xc] ss:$16 sps:$4 sm:$0xff]   ;;  %v5732_v58 = vld [vmem:[#allocation2 + $0x18] ss:$28 sps:$4 sm:$0xff]  }
  0xf4   :  { %1792 = vmatpush1.bf16.msra.mxu0 %v5630_v59  ;;  %2084 = vmatpush1.bf16.msra.mxu1 %v5633_v60  ;;  %v6246_v59 = vmov 0   ;;  %v5736_v60 = vld [vmem:[#allocation7] ss:$16 sps:$4 sm:$0xff]  }
  0xf5   :  { %1793 = vmatprep.subr.bf16.mxu0 %v5638_v61  ;;  %2085 = vmatprep.subr.bf16.mxu1 %v5641_v62  ;;  %v5739_v61 = vld [vmem:[#allocation7 + $0x8] ss:$16 sps:$4 sm:$0xff]   ;;  %v5744_v62 = vld [vmem:[#allocation7 + $0x24] ss:$16 sps:$4 sm:$0xff]  }
  0xf8   :  { %1794 = vmatpush1.bf16.msra.mxu0 %v5636_v63  ;;  %2086 = vmatpush1.bf16.msra.mxu1 %v5639_v0  ;;  %v5747_v63 = vld [vmem:[#allocation7 + $0x2c] ss:$16 sps:$4 sm:$0xff]   ;;  %v5742_v0 = vld [vmem:[#allocation7 + $0x20] ss:$16 sps:$4 sm:$0xff]  }
  0xf9   :  { %1795 = vmatprep.subr.bf16.mxu0 %v5647_v1  ;;  %2087 = vmatprep.subr.bf16.mxu1 %v5650_v2  ;;  %v5745_v1 = vld [vmem:[#allocation7 + $0x28] ss:$16 sps:$4 sm:$0xff]   ;;  %v5750_v2 = vld [vmem:[#allocation7 + $0x44] ss:$16 sps:$4 sm:$0xff]  }
  0xfc   :  { %1796 = vmatpush1.bf16.msra.mxu0 %v5645_v3  ;;  %2088 = vmatpush1.bf16.msra.mxu1 %v5648_v4  ;;  %v5753_v3 = vld [vmem:[#allocation7 + $0x4c] ss:$16 sps:$4 sm:$0xff]  }
  0xfd   :  { %1797 = vmatprep.subr.bf16.mxu0 %v5653_v5  ;;  %2089 = vmatprep.subr.bf16.mxu1 %v5656_v6  ;;  %v5733_v4 = vld [vmem:[#allocation2 + $0x50] ss:$28 sps:$4 sm:$0xff]   ;;  %v5751_v6 = vld [vmem:[#allocation7 + $0x48] ss:$16 sps:$4 sm:$0xff]  }
  0xfe   :  { %v5748_v5 = vld [vmem:[#allocation7 + $0x40] ss:$16 sps:$4 sm:$0xff]  }
 0x100   :  { %1798 = vmatpush1.bf16.msra.mxu0 %v5651_v7  ;;  %2090 = vmatpush1.bf16.msra.mxu1 %v5654_v8  ;;  %v5756_v7 = vld [vmem:[#allocation7 + $0x64] ss:$16 sps:$4 sm:$0xff]   ;;  %v5759_v8 = vld [vmem:[#allocation7 + $0x6c] ss:$16 sps:$4 sm:$0xff]  }
 0x101   :  { %1799 = vmatprep.subr.bf16.mxu0 %v5662_v9  ;;  %2091 = vmatprep.subr.bf16.mxu1 %v5665_v10  ;;  %v5754_v9 = vld [vmem:[#allocation7 + $0x60] ss:$16 sps:$4 sm:$0xff]   ;;  %v5757_v10 = vld [vmem:[#allocation7 + $0x68] ss:$16 sps:$4 sm:$0xff]  }
 0x104   :  { %1800 = vmatpush1.bf16.msra.mxu0 %v5660_v11  ;;  %2092 = vmatpush1.bf16.msra.mxu1 %v5663_v12  ;;  %v5762_v11 = vld [vmem:[#allocation7 + $0x84] ss:$16 sps:$4 sm:$0xff]   ;;  %v5765_v12 = vld [vmem:[#allocation7 + $0x8c] ss:$16 sps:$4 sm:$0xff]  }
 0x105   :  { %1801 = vmatprep.subr.bf16.mxu0 %v5668_v13  ;;  %2093 = vmatprep.subr.bf16.mxu1 %v5671_v14  ;;  %v5734_v13 = vld [vmem:[#allocation2 + $0x88] ss:$28 sps:$4 sm:$0xff]   ;;  %v5760_v14 = vld [vmem:[#allocation7 + $0x80] ss:$16 sps:$4 sm:$0xff]  }
 0x108   :  { %1802 = vmatpush1.bf16.msra.mxu0 %v5666_v15  ;;  %2094 = vmatpush1.bf16.msra.mxu1 %v5669_v16  ;;  %v5763_v15 = vld [vmem:[#allocation7 + $0x88] ss:$16 sps:$4 sm:$0xff]   ;;  %v5768_v16 = vld [vmem:[#allocation7 + $0xa4] ss:$16 sps:$4 sm:$0xff]  }
 0x109   :  { %1844 = vmatprep.subr.bf16.mxu0 %v5677_v17  ;;  %2136 = vmatprep.subr.bf16.mxu1 %v5680_v18  ;;  %v5771_v17 = vld [vmem:[#allocation7 + $0xac] ss:$16 sps:$4 sm:$0xff]   ;;  %v5766_v18 = vld [vmem:[#allocation7 + $0xa0] ss:$16 sps:$4 sm:$0xff]  }
 0x10b   :  { %1804 = vmatmul.mubr.bf16.vlgmr.msra.gmra.mrb[0].mxu0 %v5672_v19  ;;  %2096 = vmatmul.mubr.bf16.vlgmr.msra.gmra.mrb[0].mxu1 %v5672_v19  ;;  %v5769_v19 = vld [vmem:[#allocation7 + $0xa8] ss:$16 sps:$4 sm:$0xff]  }
 0x10c   :  { %1845 = vmatpush1.bf16.msra.mxu0 %v5675_v20  ;;  %2137 = vmatpush1.bf16.msra.mxu1 %v5678_v21  ;;  %v5774_v20 = vld [vmem:[#allocation7 + $0xc4] ss:$16 sps:$4 sm:$0xff]   ;;  %v5777_v21 = vld [vmem:[#allocation7 + $0xcc] ss:$16 sps:$4 sm:$0xff]  }
 0x10d   :  { %1846 = vmatprep.subr.bf16.mxu0 %v5683_v22  ;;  %2138 = vmatprep.subr.bf16.mxu1 %v5686_v23  ;;  %v5735_v22 = vld [vmem:[#allocation2 + $0xc0] ss:$28 sps:$4 sm:$0xff]  }
 0x10e   :  { %1813 = vmatprep.mubr.bf16.mxu0 %v5687_v24  ;;  %2105 = vmatprep.mubr.bf16.mxu1 %v5687_v24  ;;  %v5772_v23 = vld [vmem:[#allocation7 + $0xc0] ss:$16 sps:$4 sm:$0xff]   ;;  %v5775_v24 = vld [vmem:[#allocation7 + $0xc8] ss:$16 sps:$4 sm:$0xff]  }
 0x110   :  { %1847 = vmatpush1.bf16.msra.mxu0 %v5681_v25  ;;  %2139 = vmatpush1.bf16.msra.mxu1 %v5684_v26  ;;  %v5780_v25 = vld [vmem:[#allocation7 + $0xe4] ss:$16 sps:$4 sm:$0xff]   ;;  %v5783_v26 = vld [vmem:[#allocation7 + $0xec] ss:$16 sps:$4 sm:$0xff]  }
 0x111   :  { %1848 = vmatprep.subr.bf16.mxu0 %v5692_v27  ;;  %2140 = vmatprep.subr.bf16.mxu1 %v5695_v28  ;;  %v5778_v27 = vld [vmem:[#allocation7 + $0xe0] ss:$16 sps:$4 sm:$0xff]   ;;  %v5781_v28 = vld [vmem:[#allocation7 + $0xe8] ss:$16 sps:$4 sm:$0xff]  }
 0x113   :  { %1814 = vmatmul.mubr.bf16.gmra.mrb[4].mxu0 %v5689_v29  ;;  %2106 = vmatmul.mubr.bf16.gmra.mrb[4].mxu1 %v5689_v29  ;;  %v5786_v29 = vld [vmem:[#allocation7 + $0x104] ss:$16 sps:$4 sm:$0xff]  }
 0x114   :  { %1849 = vmatpush1.bf16.msra.mxu0 %v5690_v30  ;;  %2141 = vmatpush1.bf16.msra.mxu1 %v5693_v31  ;;  %v5789_v30 = vld [vmem:[#allocation7 + $0x10c] ss:$16 sps:$4 sm:$0xff]   ;;  %v5784_v31 = vld [vmem:[#allocation7 + $0x100] ss:$16 sps:$4 sm:$0xff]  }
 0x115   :  { %1850 = vmatprep.subr.bf16.mxu0 %v5698_v32  ;;  %2142 = vmatprep.subr.bf16.mxu1 %v5701_v33  ;;  %v5787_v32 = vld [vmem:[#allocation7 + $0x108] ss:$16 sps:$4 sm:$0xff]   ;;  %v5792_v33 = vld [vmem:[#allocation7 + $0x124] ss:$16 sps:$4 sm:$0xff]  }
 0x116   :  { %1823 = vmatprep.mubr.bf16.mxu0 %v5702_v35  ;;  %2115 = vmatprep.mubr.bf16.mxu1 %v5702_v35  ;;  %v5790_v35 = vld [vmem:[#allocation7 + $0x120] ss:$16 sps:$4 sm:$0xff]  }
 0x118   :  { %1851 = vmatpush1.bf16.msra.mxu0 %v5696_v34  ;;  %2143 = vmatpush1.bf16.msra.mxu1 %v5699_v36  ;;  %v5795_v34 = vld [vmem:[#allocation7 + $0x12c] ss:$16 sps:$4 sm:$0xff]   ;;  %v5793_v36 = vld [vmem:[#allocation7 + $0x128] ss:$16 sps:$4 sm:$0xff]  }
 0x119   :  { %1852 = vmatprep.subr.bf16.mxu0 %v5707_v37  ;;  %2144 = vmatprep.subr.bf16.mxu1 %v5710_v38  ;;  %v5798_v37 = vld [vmem:[#allocation7 + $0x144] ss:$16 sps:$4 sm:$0xff]   ;;  %v5801_v38 = vld [vmem:[#allocation7 + $0x14c] ss:$16 sps:$4 sm:$0xff]  }
 0x11b   :  { %1824 = vmatmul.mubr.bf16.gmra.mrb[8].mxu0 %v5704_v39  ;;  %2116 = vmatmul.mubr.bf16.gmra.mrb[8].mxu1 %v5704_v39  ;;  %v5796_v39 = vld [vmem:[#allocation7 + $0x140] ss:$16 sps:$4 sm:$0xff]  }
 0x11c   :  { %1853 = vmatpush1.bf16.msra.mxu0 %v5705_v40  ;;  %2145 = vmatpush1.bf16.msra.mxu1 %v5708_v41  ;;  %v5799_v40 = vld [vmem:[#allocation7 + $0x148] ss:$16 sps:$4 sm:$0xff]   ;;  %v5804_v41 = vld [vmem:[#allocation7 + $0x164] ss:$16 sps:$4 sm:$0xff]  }
 0x11d   :  { %1854 = vmatprep.subr.bf16.mxu0 %v5713_v42  ;;  %2146 = vmatprep.subr.bf16.mxu1 %v5716_v43  ;;  %v5807_v42 = vld [vmem:[#allocation7 + $0x16c] ss:$16 sps:$4 sm:$0xff]   ;;  %v5802_v43 = vld [vmem:[#allocation7 + $0x160] ss:$16 sps:$4 sm:$0xff]  }
 0x11e   :  { %1833 = vmatprep.mubr.bf16.mxu0 %v5717_v44  ;;  %2125 = vmatprep.mubr.bf16.mxu1 %v5717_v44  ;;  %v5805_v44 = vld [vmem:[#allocation7 + $0x168] ss:$16 sps:$4 sm:$0xff]  }
 0x120   :  { %1855 = vmatpush1.bf16.msra.mxu0 %v5711_v45  ;;  %2147 = vmatpush1.bf16.msra.mxu1 %v5714_v46  ;;  %v5810_v45 = vld [vmem:[#allocation7 + $0x184] ss:$16 sps:$4 sm:$0xff]   ;;  %v5813_v46 = vld [vmem:[#allocation7 + $0x18c] ss:$16 sps:$4 sm:$0xff]  }
 0x121   :  { %1856 = vmatprep.subr.bf16.mxu0 %v5722_v47  ;;  %2148 = vmatprep.subr.bf16.mxu1 %v5725_v48  ;;  %v5808_v47 = vld [vmem:[#allocation7 + $0x180] ss:$16 sps:$4 sm:$0xff]   ;;  %v5811_v48 = vld [vmem:[#allocation7 + $0x188] ss:$16 sps:$4 sm:$0xff]  }
 0x123   :  { %1834 = vmatmul.mubr.bf16.gmra.mrb[12].mxu0 %v5719_v49  ;;  %2126 = vmatmul.mubr.bf16.gmra.mrb[12].mxu1 %v5719_v49  ;;  %v5816_v49 = vld [vmem:[#allocation7 + $0x1a4] ss:$16 sps:$4 sm:$0xff]  }
 0x124   :  { %1857 = vmatpush1.bf16.msra.mxu0 %v5720_v50  ;;  %2149 = vmatpush1.bf16.msra.mxu1 %v5723_v51  ;;  %v5819_v50 = vld [vmem:[#allocation7 + $0x1ac] ss:$16 sps:$4 sm:$0xff]   ;;  %v5814_v51 = vld [vmem:[#allocation7 + $0x1a0] ss:$16 sps:$4 sm:$0xff]  }
 0x125   :  { %1858 = vmatprep.subr.bf16.mxu0 %v5728_v52  ;;  %2150 = vmatprep.subr.bf16.mxu1 %v5731_v53  ;;  %v5817_v52 = vld [vmem:[#allocation7 + $0x1a8] ss:$16 sps:$4 sm:$0xff]   ;;  %v5822_v53 = vld [vmem:[#allocation7 + $0x1c4] ss:$16 sps:$4 sm:$0xff]  }
 0x126   :  { %1876 = vmatprep.mubr.bf16.mxu0 %v6246_v59  ;;  %2168 = vmatprep.mubr.bf16.mxu1 %v6246_v59 }
 0x128   :  { %1859 = vmatpush1.bf16.msra.mxu0 %v5726_v54  ;;  %2151 = vmatpush1.bf16.msra.mxu1 %v5729_v55  ;;  %v5825_v54 = vld [vmem:[#allocation7 + $0x1cc] ss:$16 sps:$4 sm:$0xff]   ;;  %v5820_v55 = vld [vmem:[#allocation7 + $0x1c0] ss:$16 sps:$4 sm:$0xff]  }
 0x129   :  { %3079 = vmatprep.subr.bf16.mxu0 %v5738_v56  ;;  %3225 = vmatprep.subr.bf16.mxu1 %v5741_v57  ;;  %v5823_v56 = vld [vmem:[#allocation7 + $0x1c8] ss:$16 sps:$4 sm:$0xff]   ;;  %v5828_v57 = vld [vmem:[#allocation7 + $0x1e4] ss:$16 sps:$4 sm:$0xff]  }
 0x12b   :  { %1877 = vmatmul.mubr.bf16.vlgmr.msra.gmra.mrb[0].mxu0 %v5732_v58  ;;  %2169 = vmatmul.mubr.bf16.vlgmr.msra.gmra.mrb[0].mxu1 %v5732_v58  ;;  %v5831_v58 = vld [vmem:[#allocation7 + $0x1ec] ss:$16 sps:$4 sm:$0xff]  }
 0x12c   :  { %1886 = vmatprep.mubr.bf16.mxu0 %v6246_v59  ;;  %2178 = vmatprep.mubr.bf16.mxu1 %v6246_v59 }
 0x12d   :  { %3080 = vmatpush1.bf16.msra.mxu0 %v5736_v60  ;;  %3226 = vmatpush1.bf16.msra.mxu1 %v5739_v61  ;;  %v5829_v60 = vld [vmem:[#allocation7 + $0x1e8] ss:$16 sps:$4 sm:$0xff]   ;;  %v5834_v61 = vld [vmem:[#allocation7 + $0x204] ss:$16 sps:$4 sm:$0xff]  }
 0x12e   :  { %3081 = vmatprep.subr.bf16.mxu0 %v5744_v62  ;;  %3227 = vmatprep.subr.bf16.mxu1 %v5747_v63  ;;  %v5837_v62 = vld [vmem:[#allocation7 + $0x20c] ss:$16 sps:$4 sm:$0xff]   ;;  %v341_v63 = vlaneseq }
 0x131   :  { %3082 = vmatpush1.bf16.msra.mxu0 %v5742_v0  ;;  %3228 = vmatpush1.bf16.msra.mxu1 %v5745_v1  ;;  %v342_v0 = vshrl.u32 %v341_v63, 7 }
 0x132   :  { %3083 = vmatprep.subr.bf16.mxu0 %v5750_v2  ;;  %3229 = vmatprep.subr.bf16.mxu1 %v5753_v3  ;;  %v339_v3 = vld [vmem:[%s6649_s2] sm:$0xf] }
 0x133   :  { %1887 = vmatmul.mubr.bf16.gmra.mrb[4].mxu0 %v5733_v4  ;;  %2179 = vmatmul.mubr.bf16.gmra.mrb[4].mxu1 %v5733_v4  ;;  %v6354_v1 = vsub.s32 0, %v342_v0  ;;  %v6356_v2 = vsub.s32 2, %v342_v0  ;;  %v6361_v4 = vsub.s32 1, %v342_v0 }
 0x134   :  { %1896 = vmatprep.mubr.bf16.mxu0 %v6246_v59  ;;  %2188 = vmatprep.mubr.bf16.mxu1 %v6246_v59 }
 0x135   :  { %3084 = vmatpush1.bf16.msra.mxu0 %v5748_v5  ;;  %3230 = vmatpush1.bf16.msra.mxu1 %v5751_v6  ;;  %v6363_v5 = vsub.s32 3, %v342_v0  ;;  %v6366_v6 = vrot.slane %v339_v3, %v6354_v1 }
 0x136   :  { %3085 = vmatprep.subr.bf16.mxu0 %v5756_v7  ;;  %3231 = vmatprep.subr.bf16.mxu1 %v5759_v8  ;;  %v6369_v7 = vrot.slane %v339_v3, %v6356_v2  ;;  %v6372_v8 = vrot.slane %v339_v3, %v6361_v4 }
 0x139   :  { %3086 = vmatpush1.bf16.msra.mxu0 %v5754_v9  ;;  %3232 = vmatpush1.bf16.msra.mxu1 %v5757_v10  ;;  %v6375_v9 = vrot.slane %v339_v3, %v6363_v5 }
 0x13a   :  { %3087 = vmatprep.subr.bf16.mxu0 %v5762_v11  ;;  %3233 = vmatprep.subr.bf16.mxu1 %v5765_v12 }
 0x13b   :  { %1897 = vmatmul.mubr.bf16.gmra.mrb[8].mxu0 %v5734_v13  ;;  %2189 = vmatmul.mubr.bf16.gmra.mrb[8].mxu1 %v5734_v13 }
 0x13c   :  { %1906 = vmatprep.mubr.bf16.mxu0 %v6246_v59  ;;  %2198 = vmatprep.mubr.bf16.mxu1 %v6246_v59  ;;  %v5826_v59 = vld [vmem:[#allocation7 + $0x1e0] ss:$16 sps:$4 sm:$0xff]  }
 0x13d   :  { %3088 = vmatpush1.bf16.msra.mxu0 %v5760_v14  ;;  %3234 = vmatpush1.bf16.msra.mxu1 %v5763_v15 }
 0x13e   :  { %3089 = vmatprep.subr.bf16.mxu0 %v5768_v16  ;;  %3235 = vmatprep.subr.bf16.mxu1 %v5771_v17 }
 0x141   :  { %3090 = vmatpush1.bf16.msra.mxu0 %v5766_v18  ;;  %3236 = vmatpush1.bf16.msra.mxu1 %v5769_v19 }
 0x142   :  { %3091 = vmatprep.subr.bf16.mxu0 %v5774_v20  ;;  %3237 = vmatprep.subr.bf16.mxu1 %v5777_v21 }
 0x143   :  { %1907 = vmatmul.mubr.bf16.gmra.mrb[12].mxu0 %v5735_v22  ;;  %2199 = vmatmul.mubr.bf16.gmra.mrb[12].mxu1 %v5735_v22 }
 0x145   :  { %3092 = vmatpush1.bf16.msra.mxu0 %v5772_v23  ;;  %3238 = vmatpush1.bf16.msra.mxu1 %v5775_v24 }
 0x146   :  { %3093 = vmatprep.subr.bf16.mxu0 %v5780_v25  ;;  %3239 = vmatprep.subr.bf16.mxu1 %v5783_v26 }
 0x149   :  { %3094 = vmatpush1.bf16.msra.mxu0 %v5778_v27  ;;  %3240 = vmatpush1.bf16.msra.mxu1 %v5781_v28 }
 0x14a   :  { %3095 = vmatprep.subr.bf16.mxu0 %v5786_v29  ;;  %3241 = vmatprep.subr.bf16.mxu1 %v5789_v30 }
 0x14d   :  { %3096 = vmatpush1.bf16.msra.mxu0 %v5784_v31  ;;  %3242 = vmatpush1.bf16.msra.mxu1 %v5787_v32 }
 0x14e   :  { %3097 = vmatprep.subr.bf16.mxu0 %v5792_v33  ;;  %3243 = vmatprep.subr.bf16.mxu1 %v5795_v34 }
 0x151   :  { %3098 = vmatpush1.bf16.msra.mxu0 %v5790_v35  ;;  %3244 = vmatpush1.bf16.msra.mxu1 %v5793_v36 }
 0x152   :  { %3099 = vmatprep.subr.bf16.mxu0 %v5798_v37  ;;  %3245 = vmatprep.subr.bf16.mxu1 %v5801_v38 }
 0x155   :  { %3100 = vmatpush1.bf16.msra.mxu0 %v5796_v39  ;;  %3246 = vmatpush1.bf16.msra.mxu1 %v5799_v40 }
 0x156   :  { %3101 = vmatprep.subr.bf16.mxu0 %v5804_v41  ;;  %3247 = vmatprep.subr.bf16.mxu1 %v5807_v42 }
 0x159   :  { %3102 = vmatpush1.bf16.msra.mxu0 %v5802_v43  ;;  %3248 = vmatpush1.bf16.msra.mxu1 %v5805_v44 }
 0x15a   :  { %3103 = vmatprep.subr.bf16.mxu0 %v5810_v45  ;;  %3249 = vmatprep.subr.bf16.mxu1 %v5813_v46 }
 0x15d   :  { %3104 = vmatpush1.bf16.msra.mxu0 %v5808_v47  ;;  %3250 = vmatpush1.bf16.msra.mxu1 %v5811_v48 }
 0x15e   :  { %3105 = vmatprep.subr.bf16.mxu0 %v5816_v49  ;;  %3251 = vmatprep.subr.bf16.mxu1 %v5819_v50  ;;  %v5832_v50 = vld [vmem:[#allocation7 + $0x200] ss:$16 sps:$4 sm:$0xff]  }
 0x161   :  { %3106 = vmatpush1.bf16.msra.mxu0 %v5814_v51  ;;  %3252 = vmatpush1.bf16.msra.mxu1 %v5817_v52  ;;  %v5835_v51 = vld [vmem:[#allocation7 + $0x208] ss:$16 sps:$4 sm:$0xff]  }
 0x162   :  { %3107 = vmatprep.subr.bf16.mxu0 %v5822_v53  ;;  %3253 = vmatprep.subr.bf16.mxu1 %v5825_v54 }
 0x165   :  { %3108 = vmatpush1.bf16.msra.mxu0 %v5820_v55  ;;  %3254 = vmatpush1.bf16.msra.mxu1 %v5823_v56  ;;  %v5840_v56 = vld [vmem:[#allocation7 + $0x224] ss:$16 sps:$4 sm:$0xff]  }
 0x166   :  { %3109 = vmatprep.subr.bf16.mxu0 %v5828_v57  ;;  %3255 = vmatprep.subr.bf16.mxu1 %v5831_v58  ;;  %v5843_v57 = vld [vmem:[#allocation7 + $0x22c] ss:$16 sps:$4 sm:$0xff]  }
 0x169   :  { %3110 = vmatpush1.bf16.msra.mxu0 %v5826_v59  ;;  %3256 = vmatpush1.bf16.msra.mxu1 %v5829_v60 }
 0x16a   :  { %3152 = vmatprep.subr.bf16.mxu0 %v5834_v61  ;;  %3298 = vmatprep.subr.bf16.mxu1 %v5837_v62 }
 0x1fe   :  { %v1878_v10 = vpop.f32.mrb[0].mxu0  ;;  %v2170_v11 = vpop.f32.mrb[0].mxu1 }
 0x1ff   :  { %v5092_v12 = vadd.f32 %v1878_v10, %v6366_v6  ;;  %v5108_v13 = vadd.f32 %v2170_v11, %v6369_v7  ;;  %v1880_v14 = vpop.f32.mrb[1].mxu0  ;;  %v2172_v15 = vpop.f32.mrb[1].mxu1 }
 0x200   :  { %v5093_v16 = vadd.f32 %v1880_v14, %v6372_v8  ;;  %v5109_v17 = vadd.f32 %v2172_v15, %v6375_v9  ;;  %v1882_v18 = vpop.f32.mrb[2].mxu0  ;;  %v2174_v19 = vpop.f32.mrb[2].mxu1  ;;  %v5838_v15 = vld [vmem:[#allocation7 + $0x220] ss:$16 sps:$4 sm:$0xff]  }
 0x201   :  { %v2209_v20 = vmul.f32 0.2, %v5092_v12  ;;  %v2211_v21 = vmul.f32 0.2, %v5108_v13  ;;  %v5094_v22 = vadd.f32 %v1882_v18, %v6366_v6  ;;  %v5110_v23 = vadd.f32 %v2174_v19, %v6369_v7  ;;  %v1884_v24 = vpop.f32.mrb[3].mxu0  ;;  %v2176_v25 = vpop.f32.mrb[3].mxu1 }
 0x202   :  { %v2210_v26 = vmul.f32 0.2, %v5093_v16  ;;  %v2212_v27 = vmul.f32 0.2, %v5109_v17  ;;  %v5095_v28 = vadd.f32 %v1884_v24, %v6372_v8  ;;  %v5111_v29 = vadd.f32 %v2176_v25, %v6375_v9  ;;  %v5841_v19 = vld [vmem:[#allocation7 + $0x228] ss:$16 sps:$4 sm:$0xff]  }
 0x203   :  { %v2213_v30 = vmul.f32 0.2, %v5094_v22  ;;  %v2215_v31 = vmul.f32 0.2, %v5110_v23  ;;  %v2241_v34 = vmax.f32 %v5092_v12, %v2209_v20  ;;  %v2243_v35 = vmax.f32 %v5108_v13, %v2211_v21  ;;  %v5849_v24 = vld [vmem:[#allocation7 + $0x24c] ss:$16 sps:$4 sm:$0xff]  }
 0x204   :  { %v2214_v32 = vmul.f32 0.2, %v5095_v28  ;;  %v2216_v33 = vmul.f32 0.2, %v5111_v29  ;;  %v2242_v38 = vmax.f32 %v5093_v16, %v2210_v26  ;;  %v2244_v39 = vmax.f32 %v5109_v17, %v2212_v27 }
 0x205   :  { %v2245_v36 = vmax.f32 %v5094_v22, %v2213_v30  ;;  %v2247_v37 = vmax.f32 %v5110_v23, %v2215_v31  ;;  %v5846_v23 = vld [vmem:[#allocation7 + $0x244] ss:$16 sps:$4 sm:$0xff]  }
 0x206   :  { %v2246_v40 = vmax.f32 %v5095_v28, %v2214_v32  ;;  %v2248_v41 = vmax.f32 %v5111_v29, %v2216_v33  ;;  %v1888_v42 = vpop.f32.mrb[4].mxu0  ;;  %v2180_v43 = vpop.f32.mrb[4].mxu1 }
 0x207   :  { %v2273_v44 = vpack.c.bf16 %v2245_v36, %v2241_v34  ;;  %v6385_v45 = vpack.c.bf16 %v2247_v37, %v2243_v35  ;;  %v5096_v46 = vadd.f32 %v1888_v42, %v6366_v6  ;;  %v5112_v47 = vadd.f32 %v2180_v43, %v6369_v7  ;;  %v1890_v48 = vpop.f32.mrb[5].mxu0  ;;  %v2182_v49 = vpop.f32.mrb[5].mxu1  ;;  %v5844_v34 = vld [vmem:[#allocation7 + $0x240] ss:$16 sps:$4 sm:$0xff]   ;;  %v5847_v35 = vld [vmem:[#allocation7 + $0x248] ss:$16 sps:$4 sm:$0xff]  }
 0x208   :  { %v5097_v52 = vadd.f32 %v1890_v48, %v6372_v8  ;;  %v1892_v53 = vpop.f32.mrb[6].mxu0  ;;  %v2184_v54 = vpop.f32.mrb[6].mxu1  ;;  %v2274_v55 = vpack.c.bf16 %v2246_v40, %v2242_v38  ;;  %v6390_v58 = vpack.c.bf16 %v2248_v41, %v2244_v39  ;;  %v6395_v10 = vadd.f32 %v2182_v49, %v6375_v9  ;;  %v5852_v43 = vld [vmem:[#allocation7 + $0x264] ss:$16 sps:$4 sm:$0xff]  }
 0x209   :  { %v2217_v59 = vmul.f32 0.2, %v5096_v46  ;;  %v2219_v60 = vmul.f32 0.2, %v5112_v47  ;;  %v5098_v61 = vadd.f32 %v1892_v53, %v6366_v6  ;;  %v5114_v62 = vadd.f32 %v2184_v54, %v6369_v7  ;;  %v1894_v63 = vpop.f32.mrb[7].mxu0  ;;  %v2186_v0 = vpop.f32.mrb[7].mxu1 }
 0x20a   :  { %v2218_v3 = vmul.f32 0.2, %v5097_v52  ;;  %v5099_v11 = vadd.f32 %v1894_v63, %v6372_v8  ;;  %v6399_v12 = vadd.f32 %v2186_v0, %v6375_v9  ;;  %3111 = vmatprep.mubr.bf16.mxu0 %v2274_v55  ;;  %3257 = vmatprep.mubr.bf16.mxu1 %v2274_v55  ;;  %v2220_v26 = vmul.f32 0.2, %v6395_v10 }
 0x20b   :  { %v2221_v13 = vmul.f32 0.2, %v5098_v61  ;;  %v2223_v14 = vmul.f32 0.2, %v5114_v62  ;;  %3112 = vmatmul.mubr.bf16.vlgmr.msra.gmra.mrb[16].mxu0 %v2273_v44  ;;  %3258 = vmatmul.mubr.bf16.vlgmr.msra.gmra.mrb[16].mxu1 %v2273_v44  ;;  %v2249_v16 = vmax.f32 %v5096_v46, %v2217_v59  ;;  %v2251_v20 = vmax.f32 %v5112_v47, %v2219_v60  ;;  %v5855_v44 = vld [vmem:[#allocation7 + $0x26c] ss:$16 sps:$4 sm:$0xff]  }
 0x20c   :  { %v2222_v17 = vmul.f32 0.2, %v5099_v11  ;;  %v6402_v18 = vmul.f32 0.2, %v6399_v12  ;;  %3153 = vmatpush1.bf16.msra.mxu0 %v5832_v50  ;;  %3299 = vmatpush1.bf16.msra.mxu1 %v5835_v51  ;;  %v2250_v25 = vmax.f32 %v5097_v52, %v2218_v3  ;;  %v5850_v60 = vld [vmem:[#allocation7 + $0x260] ss:$16 sps:$4 sm:$0xff]  }
 0x20d   :  { %v2253_v21 = vmax.f32 %v5098_v61, %v2221_v13  ;;  %v2255_v22 = vmax.f32 %v5114_v62, %v2223_v14  ;;  %3154 = vmatprep.subr.bf16.mxu0 %v5840_v56  ;;  %3300 = vmatprep.subr.bf16.mxu1 %v5843_v57  ;;  %v2252_v56 = vmax.f32 %v6395_v10, %v2220_v26  ;;  %v5853_v3 = vld [vmem:[#allocation7 + $0x268] ss:$16 sps:$4 sm:$0xff]   ;;  %v5858_v10 = vld [vmem:[#allocation7 + $0x284] ss:$16 sps:$4 sm:$0xff]   ;;  %v5861_v13 = vld [vmem:[#allocation7 + $0x28c] ss:$16 sps:$4 sm:$0xff]  }
 0x20e   :  { %v2254_v27 = vmax.f32 %v5099_v11, %v2222_v17  ;;  %v1898_v28 = vpop.f32.mrb[8].mxu0  ;;  %v2190_v29 = vpop.f32.mrb[8].mxu1  ;;  %v2256_v38 = vmax.f32 %v6399_v12, %v6402_v18  ;;  %v5859_v26 = vld [vmem:[#allocation7 + $0x288] ss:$16 sps:$4 sm:$0xff]  }
 0x20f   :  { %v6406_v30 = vadd.f32 %v1898_v28, %v6366_v6  ;;  %v6409_v31 = vadd.f32 %v2190_v29, %v6369_v7  ;;  %v1900_v32 = vpop.f32.mrb[9].mxu0  ;;  %v2192_v33 = vpop.f32.mrb[9].mxu1  ;;  %v2277_v36 = vpack.c.bf16 %v2253_v21, %v2249_v16  ;;  %v6411_v37 = vpack.c.bf16 %v2255_v22, %v2251_v20 }
 0x210   :  { %v6416_v39 = vadd.f32 %v1900_v32, %v6372_v8  ;;  %3155 = vmatpush1.bf16.msra.mxu0 %v5838_v15  ;;  %3301 = vmatpush1.bf16.msra.mxu1 %v5841_v19  ;;  %v1902_v40 = vpop.f32.mrb[10].mxu0  ;;  %v2194_v41 = vpop.f32.mrb[10].mxu1  ;;  %v2278_v42 = vpack.c.bf16 %v2254_v27, %v2250_v25  ;;  %v6424_v53 = vadd.f32 %v2192_v33, %v6375_v9  ;;  %v5856_v25 = vld [vmem:[#allocation7 + $0x280] ss:$16 sps:$4 sm:$0xff]  }
 0x211   :  { %v2225_v46 = vmul.f32 0.2, %v6406_v30  ;;  %v2227_v47 = vmul.f32 0.2, %v6409_v31  ;;  %v5102_v48 = vadd.f32 %v1902_v40, %v6366_v6  ;;  %v5118_v49 = vadd.f32 %v2194_v41, %v6369_v7  ;;  %v1904_v50 = vpop.f32.mrb[11].mxu0  ;;  %v2196_v51 = vpop.f32.mrb[11].mxu1  ;;  %3156 = vmatprep.subr.bf16.mxu0 %v5846_v23  ;;  %3302 = vmatprep.subr.bf16.mxu1 %v5849_v24 }
 0x212   :  { %v2226_v52 = vmul.f32 0.2, %v6416_v39  ;;  %v5103_v54 = vadd.f32 %v1904_v50, %v6372_v8  ;;  %v6428_v55 = vadd.f32 %v2196_v51, %v6375_v9  ;;  %3121 = vmatprep.mubr.bf16.mxu0 %v2278_v42  ;;  %3267 = vmatprep.mubr.bf16.mxu1 %v2278_v42  ;;  %v6436_v14 = vpack.c.bf16 %v2256_v38, %v2252_v56 }
 0x213   :  { %v2229_v57 = vmul.f32 0.2, %v5102_v48  ;;  %v2231_v59 = vmul.f32 0.2, %v5118_v49  ;;  %3122 = vmatmul.mubr.bf16.gmra.mrb[20].mxu0 %v2277_v36  ;;  %3268 = vmatmul.mubr.bf16.gmra.mrb[20].mxu1 %v2277_v36  ;;  %v2257_v61 = vmax.f32 %v6406_v30, %v2225_v46  ;;  %v2259_v62 = vmax.f32 %v6409_v31, %v2227_v47 }
 0x214   :  { %v2230_v63 = vmul.f32 0.2, %v5103_v54  ;;  %v6434_v0 = vmul.f32 0.2, %v6428_v55  ;;  %3157 = vmatpush1.bf16.msra.mxu0 %v5844_v34  ;;  %3303 = vmatpush1.bf16.msra.mxu1 %v5847_v35  ;;  %v2258_v15 = vmax.f32 %v6416_v39, %v2226_v52  ;;  %v2228_v16 = vmul.f32 0.2, %v6424_v53 }
 0x215   :  { %v2261_v11 = vmax.f32 %v5102_v48, %v2229_v57  ;;  %v2263_v12 = vmax.f32 %v5118_v49, %v2231_v59  ;;  %3158 = vmatprep.subr.bf16.mxu0 %v5852_v43  ;;  %3304 = vmatprep.subr.bf16.mxu1 %v5855_v44  ;;  %v5864_v34 = vld [vmem:[#allocation7 + $0x2a4] ss:$16 sps:$4 sm:$0xff]   ;;  %v5867_v35 = vld [vmem:[#allocation7 + $0x2ac] ss:$16 sps:$4 sm:$0xff]  }
 0x216   :  { %v2262_v17 = vmax.f32 %v5103_v54, %v2230_v63  ;;  %v2264_v18 = vmax.f32 %v6428_v55, %v6434_v0  ;;  %v1908_v19 = vpop.f32.mrb[12].mxu0  ;;  %v2200_v20 = vpop.f32.mrb[12].mxu1  ;;  %v2260_v48 = vmax.f32 %v6424_v53, %v2228_v16  ;;  %v5865_v55 = vld [vmem:[#allocation7 + $0x2a8] ss:$16 sps:$4 sm:$0xff]   ;;  %v5873_v57 = vld [vmem:[#allocation7 + $0x2cc] ss:$16 sps:$4 sm:$0xff]  }
 0x217   :  { %v5104_v21 = vadd.f32 %v1908_v19, %v6366_v6  ;;  %v5120_v22 = vadd.f32 %v2200_v20, %v6369_v7  ;;  %v1910_v23 = vpop.f32.mrb[13].mxu0  ;;  %v2202_v24 = vpop.f32.mrb[13].mxu1  ;;  %v2281_v27 = vpack.c.bf16 %v2261_v11, %v2257_v61  ;;  %v6444_v28 = vpack.c.bf16 %v2263_v12, %v2259_v62  ;;  %v5868_v11 = vld [vmem:[#allocation7 + $0x2c0] ss:$16 sps:$4 sm:$0xff]   ;;  %v5871_v12 = vld [vmem:[#allocation7 + $0x2c8] ss:$16 sps:$4 sm:$0xff]  }
 0x218   :  { %v5105_v29 = vadd.f32 %v1910_v23, %v6372_v8  ;;  %v5121_v30 = vadd.f32 %v2202_v24, %v6375_v9  ;;  %3159 = vmatpush1.bf16.msra.mxu0 %v5850_v60  ;;  %3305 = vmatpush1.bf16.msra.mxu1 %v5853_v3  ;;  %v1912_v31 = vpop.f32.mrb[14].mxu0  ;;  %v2204_v32 = vpop.f32.mrb[14].mxu1  ;;  %v2282_v33 = vpack.c.bf16 %v2262_v17, %v2258_v15  ;;  %v5879_v15 = vld [vmem:[#allocation7 + $0x2ec] ss:$16 sps:$4 sm:$0xff]   ;;  %v5874_v16 = vld [vmem:[#allocation7 + $0x2e0] ss:$16 sps:$4 sm:$0xff]  }
 0x219   :  { %v2233_v36 = vmul.f32 0.2, %v5104_v21  ;;  %v2235_v38 = vmul.f32 0.2, %v5120_v22  ;;  %v5106_v39 = vadd.f32 %v1912_v31, %v6366_v6  ;;  %v5122_v40 = vadd.f32 %v2204_v32, %v6369_v7  ;;  %v1914_v41 = vpop.f32.mrb[15].mxu0  ;;  %v2206_v42 = vpop.f32.mrb[15].mxu1  ;;  %3160 = vmatprep.subr.bf16.mxu0 %v5858_v10  ;;  %3306 = vmatprep.subr.bf16.mxu1 %v5861_v13 }
 0x21a   :  { %v2234_v43 = vmul.f32 0.2, %v5105_v29  ;;  %v2236_v44 = vmul.f32 0.2, %v5121_v30  ;;  %v5107_v46 = vadd.f32 %v1914_v41, %v6372_v8  ;;  %v5123_v47 = vadd.f32 %v2206_v42, %v6375_v9  ;;  %3131 = vmatprep.mubr.bf16.mxu0 %v2282_v33  ;;  %3277 = vmatprep.mubr.bf16.mxu1 %v2282_v33  ;;  %v5862_v6 = vld [vmem:[#allocation7 + $0x2a0] ss:$16 sps:$4 sm:$0xff]  }
 0x21b   :  { %v2237_v49 = vmul.f32 0.2, %v5106_v39  ;;  %v2239_v50 = vmul.f32 0.2, %v5122_v40  ;;  %3132 = vmatmul.mubr.bf16.gmra.mrb[24].mxu0 %v2281_v27  ;;  %3278 = vmatmul.mubr.bf16.gmra.mrb[24].mxu1 %v2281_v27  ;;  %v2265_v7 = vmax.f32 %v5104_v21, %v2233_v36  ;;  %v2267_v51 = vmax.f32 %v5120_v22, %v2235_v38  ;;  %v5870_v9 = vld [vmem:[#allocation7 + $0x2c4] ss:$16 sps:$4 sm:$0xff]  }
 0x21c   :  { %v2238_v52 = vmul.f32 0.2, %v5107_v46  ;;  %v2240_v54 = vmul.f32 0.2, %v5123_v47  ;;  %3161 = vmatpush1.bf16.msra.mxu0 %v5856_v25  ;;  %3307 = vmatpush1.bf16.msra.mxu1 %v5859_v26  ;;  %v6453_v59 = vpack.c.bf16 %v2264_v18, %v2260_v48  ;;  %v2266_v53 = vmax.f32 %v5105_v29, %v2234_v43  ;;  %v5876_v13 = vld [vmem:[#allocation7 + $0x2e4] ss:$16 sps:$4 sm:$0xff]  }
 0x21d   :  { %v2269_v56 = vmax.f32 %v5106_v39, %v2237_v49  ;;  %v2271_v8 = vmax.f32 %v5122_v40, %v2239_v50  ;;  %3162 = vmatprep.subr.bf16.mxu0 %v5864_v34  ;;  %3308 = vmatprep.subr.bf16.mxu1 %v5867_v35  ;;  %v2268_v60 = vmax.f32 %v5121_v30, %v2236_v44  ;;  %v5877_v17 = vld [vmem:[#allocation7 + $0x2e8] ss:$16 sps:$4 sm:$0xff]   ;;  %v5882_v18 = vld [vmem:[#allocation7 + $0x304] ss:$16 sps:$4 sm:$0xff]   ;;  %v5885_v19 = vld [vmem:[#allocation7 + $0x30c] ss:$16 sps:$4 sm:$0xff]  }
 0x21e   :  { %v2270_v61 = vmax.f32 %v5107_v46, %v2238_v52  ;;  %v2272_v62 = vmax.f32 %v5123_v47, %v2240_v54  ;;  %v5880_v20 = vld [vmem:[#allocation7 + $0x300] ss:$16 sps:$4 sm:$0xff]   ;;  %v5883_v21 = vld [vmem:[#allocation7 + $0x308] ss:$16 sps:$4 sm:$0xff]   ;;  %v5888_v22 = vld [vmem:[#allocation7 + $0x324] ss:$16 sps:$4 sm:$0xff]  }
 0x21f   :  { %v2285_v63 = vpack.c.bf16 %v2269_v56, %v2265_v7  ;;  %v6455_v0 = vpack.c.bf16 %v2271_v8, %v2267_v51  ;;  %v5891_v23 = vld [vmem:[#allocation7 + $0x32c] ss:$16 sps:$4 sm:$0xff]   ;;  %v5886_v24 = vld [vmem:[#allocation7 + $0x320] ss:$16 sps:$4 sm:$0xff]   ;;  %v5889_v25 = vld [vmem:[#allocation7 + $0x328] ss:$16 sps:$4 sm:$0xff]  }
 0x220   :  { %3163 = vmatpush1.bf16.msra.mxu0 %v5862_v6  ;;  %3309 = vmatpush1.bf16.msra.mxu1 %v5865_v55  ;;  %v2286_v3 = vpack.c.bf16 %v2270_v61, %v2266_v53  ;;  %v6457_v10 = vpack.c.bf16 %v2272_v62, %v2268_v60  ;;  %v5894_v26 = vld [vmem:[#allocation7 + $0x344] ss:$16 sps:$4 sm:$0xff]   ;;  %v5892_v27 = vld [vmem:[#allocation7 + $0x340] ss:$16 sps:$4 sm:$0xff]   ;;  %v5895_v29 = vld [vmem:[#allocation7 + $0x348] ss:$16 sps:$4 sm:$0xff]  }
 0x221   :  { %3164 = vmatprep.subr.bf16.mxu0 %v5870_v9  ;;  %3310 = vmatprep.subr.bf16.mxu1 %v5873_v57  ;;  %v5900_v30 = vld [vmem:[#allocation7 + $0x364] ss:$16 sps:$4 sm:$0xff]   ;;  %v5903_v31 = vld [vmem:[#allocation7 + $0x36c] ss:$16 sps:$4 sm:$0xff]   ;;  %v5898_v32 = vld [vmem:[#allocation7 + $0x360] ss:$16 sps:$4 sm:$0xff]  }
 0x222   :  { %3141 = vmatprep.mubr.bf16.mxu0 %v2286_v3  ;;  %3287 = vmatprep.mubr.bf16.mxu1 %v2286_v3  ;;  %v5901_v33 = vld [vmem:[#allocation7 + $0x368] ss:$16 sps:$4 sm:$0xff]   ;;  %v5906_v34 = vld [vmem:[#allocation7 + $0x384] ss:$16 sps:$4 sm:$0xff]   ;;  %v5909_v35 = vld [vmem:[#allocation7 + $0x38c] ss:$16 sps:$4 sm:$0xff]  }
 0x223   :  { %3142 = vmatmul.mubr.bf16.gmra.mrb[28].mxu0 %v2285_v63  ;;  %3288 = vmatmul.mubr.bf16.gmra.mrb[28].mxu1 %v2285_v63  ;;  %v5904_v36 = vld [vmem:[#allocation7 + $0x380] ss:$16 sps:$4 sm:$0xff]   ;;  %v5907_v38 = vld [vmem:[#allocation7 + $0x388] ss:$16 sps:$4 sm:$0xff]   ;;  %v5912_v39 = vld [vmem:[#allocation7 + $0x3a4] ss:$16 sps:$4 sm:$0xff]  }
 0x224   :  { %3165 = vmatpush1.bf16.msra.mxu0 %v5868_v11  ;;  %3311 = vmatpush1.bf16.msra.mxu1 %v5871_v12  ;;  %v5915_v40 = vld [vmem:[#allocation7 + $0x3ac] ss:$16 sps:$4 sm:$0xff]   ;;  %v5910_v41 = vld [vmem:[#allocation7 + $0x3a0] ss:$16 sps:$4 sm:$0xff]   ;;  %v5913_v42 = vld [vmem:[#allocation7 + $0x3a8] ss:$16 sps:$4 sm:$0xff]  }
 0x225   :  { %3184 = vmatprep.mubr.bf16.mxu0 %v6390_v58  ;;  %3330 = vmatprep.mubr.bf16.mxu1 %v6390_v58  ;;  %v5897_v58 = vld [vmem:[#allocation7 + $0x34c] ss:$16 sps:$4 sm:$0xff]   ;;  %v5918_v43 = vld [vmem:[#allocation7 + $0x3c4] ss:$16 sps:$4 sm:$0xff]   ;;  %v5916_v46 = vld [vmem:[#allocation7 + $0x3c0] ss:$16 sps:$4 sm:$0xff]  }
 0x226   :  { %3166 = vmatprep.subr.bf16.mxu0 %v5876_v13  ;;  %3312 = vmatprep.subr.bf16.mxu1 %v5879_v15  ;;  %v5921_v44 = vld [vmem:[#allocation7 + $0x3cc] ss:$16 sps:$4 sm:$0xff]   ;;  %v5919_v47 = vld [vmem:[#allocation7 + $0x3c8] ss:$16 sps:$4 sm:$0xff]   ;;  %v5924_v48 = vld [vmem:[#allocation7 + $0x3e4] ss:$16 sps:$4 sm:$0xff]  }
 0x227   :  { %v5927_v49 = vld [vmem:[#allocation7 + $0x3ec] ss:$16 sps:$4 sm:$0xff]   ;;  %v5922_v50 = vld [vmem:[#allocation7 + $0x3e0] ss:$16 sps:$4 sm:$0xff]   ;;  %v5925_v6 = vld [vmem:[#allocation7 + $0x3e8] ss:$16 sps:$4 sm:$0xff]  }
 0x228   :  { %3167 = vmatpush1.bf16.msra.mxu0 %v5874_v16  ;;  %3313 = vmatpush1.bf16.msra.mxu1 %v5877_v17  ;;  %v5930_v7 = vld [vmem:[#allocation8 + $0x4] ss:$16 sps:$4 sm:$0xff]   ;;  %v5933_v51 = vld [vmem:[#allocation8 + $0xc] ss:$16 sps:$4 sm:$0xff]   ;;  %v5928_v52 = vld [vmem:[#allocation8] ss:$16 sps:$4 sm:$0xff]  }
 0x229   :  { %3168 = vmatprep.subr.bf16.mxu0 %v5882_v18  ;;  %3314 = vmatprep.subr.bf16.mxu1 %v5885_v19  ;;  %v5931_v54 = vld [vmem:[#allocation8 + $0x8] ss:$16 sps:$4 sm:$0xff]   ;;  %v5936_v55 = vld [vmem:[#allocation8 + $0x24] ss:$16 sps:$4 sm:$0xff]   ;;  %v5939_v56 = vld [vmem:[#allocation8 + $0x2c] ss:$16 sps:$4 sm:$0xff]  }
 0x22a   :  { %v5934_v8 = vld [vmem:[#allocation8 + $0x20] ss:$16 sps:$4 sm:$0xff]   ;;  %v5937_v9 = vld [vmem:[#allocation8 + $0x28] ss:$16 sps:$4 sm:$0xff]   ;;  %v5942_v57 = vld [vmem:[#allocation8 + $0x44] ss:$16 sps:$4 sm:$0xff]  }
 0x22b   :  { %v5945_v53 = vld [vmem:[#allocation8 + $0x4c] ss:$16 sps:$4 sm:$0xff]   ;;  %v5940_v60 = vld [vmem:[#allocation8 + $0x40] ss:$16 sps:$4 sm:$0xff]   ;;  %v5943_v61 = vld [vmem:[#allocation8 + $0x48] ss:$16 sps:$4 sm:$0xff]  }
 0x22c   :  { %3169 = vmatpush1.bf16.msra.mxu0 %v5880_v20  ;;  %3315 = vmatpush1.bf16.msra.mxu1 %v5883_v21  ;;  %v5948_v62 = vld [vmem:[#allocation8 + $0x64] ss:$16 sps:$4 sm:$0xff]   ;;  %v5949_v63 = vld [vmem:[#allocation8 + $0x68] ss:$16 sps:$4 sm:$0xff]   ;;  %v5957_v11 = vld [vmem:[#allocation8 + $0x8c] ss:$16 sps:$4 sm:$0xff]  }
 0x22d   :  { %3170 = vmatprep.subr.bf16.mxu0 %v5888_v22  ;;  %3316 = vmatprep.subr.bf16.mxu1 %v5891_v23  ;;  %v5954_v3 = vld [vmem:[#allocation8 + $0x84] ss:$16 sps:$4 sm:$0xff]   ;;  %v5952_v12 = vld [vmem:[#allocation8 + $0x80] ss:$16 sps:$4 sm:$0xff]   ;;  %v5955_v13 = vld [vmem:[#allocation8 + $0x88] ss:$16 sps:$4 sm:$0xff]  }
 0x22e   :  { %v5960_v15 = vld [vmem:[#allocation8 + $0xa4] ss:$16 sps:$4 sm:$0xff]   ;;  %v5961_v16 = vld [vmem:[#allocation8 + $0xa8] ss:$16 sps:$4 sm:$0xff]   ;;  %v5969_v18 = vld [vmem:[#allocation8 + $0xcc] ss:$16 sps:$4 sm:$0xff]  }
 0x22f   :  { %v5966_v17 = vld [vmem:[#allocation8 + $0xc4] ss:$16 sps:$4 sm:$0xff]   ;;  %v5964_v19 = vld [vmem:[#allocation8 + $0xc0] ss:$16 sps:$4 sm:$0xff]   ;;  %v5967_v20 = vld [vmem:[#allocation8 + $0xc8] ss:$16 sps:$4 sm:$0xff]  }
 0x230   :  { %3171 = vmatpush1.bf16.msra.mxu0 %v5886_v24  ;;  %3317 = vmatpush1.bf16.msra.mxu1 %v5889_v25  ;;  %v5972_v21 = vld [vmem:[#allocation8 + $0xe4] ss:$16 sps:$4 sm:$0xff]   ;;  %v5973_v22 = vld [vmem:[#allocation8 + $0xe8] ss:$16 sps:$4 sm:$0xff]   ;;  %v5981_v24 = vld [vmem:[#allocation8 + $0x10c] ss:$16 sps:$4 sm:$0xff]  }
 0x231   :  { %3172 = vmatprep.subr.bf16.mxu0 %v5894_v26  ;;  %3318 = vmatprep.subr.bf16.mxu1 %v5897_v58  ;;  %v5978_v23 = vld [vmem:[#allocation8 + $0x104] ss:$16 sps:$4 sm:$0xff]   ;;  %v5976_v25 = vld [vmem:[#allocation8 + $0x100] ss:$16 sps:$4 sm:$0xff]   ;;  %v5979_v26 = vld [vmem:[#allocation8 + $0x108] ss:$16 sps:$4 sm:$0xff]  }
 0x232   :  { %v5984_v58 = vld [vmem:[#allocation8 + $0x124] ss:$16 sps:$4 sm:$0xff]  }
 0x234   :  { %3173 = vmatpush1.bf16.msra.mxu0 %v5892_v27  ;;  %3319 = vmatpush1.bf16.msra.mxu1 %v5895_v29  ;;  %v5987_v27 = vld [vmem:[#allocation8 + $0x12c] ss:$16 sps:$4 sm:$0xff]   ;;  %v5982_v29 = vld [vmem:[#allocation8 + $0x120] ss:$16 sps:$4 sm:$0xff]  }
 0x235   :  { %3174 = vmatprep.subr.bf16.mxu0 %v5900_v30  ;;  %3320 = vmatprep.subr.bf16.mxu1 %v5903_v31  ;;  %v5990_v30 = vld [vmem:[#allocation8 + $0x144] ss:$16 sps:$4 sm:$0xff]   ;;  %v5993_v31 = vld [vmem:[#allocation8 + $0x14c] ss:$16 sps:$4 sm:$0xff]  }
 0x238   :  { %3175 = vmatpush1.bf16.msra.mxu0 %v5898_v32  ;;  %3321 = vmatpush1.bf16.msra.mxu1 %v5901_v33  ;;  %v5988_v32 = vld [vmem:[#allocation8 + $0x140] ss:$16 sps:$4 sm:$0xff]   ;;  %v5991_v33 = vld [vmem:[#allocation8 + $0x148] ss:$16 sps:$4 sm:$0xff]  }
 0x239   :  { %3176 = vmatprep.subr.bf16.mxu0 %v5906_v34  ;;  %3322 = vmatprep.subr.bf16.mxu1 %v5909_v35  ;;  %v5996_v34 = vld [vmem:[#allocation8 + $0x164] ss:$16 sps:$4 sm:$0xff]   ;;  %v5999_v35 = vld [vmem:[#allocation8 + $0x16c] ss:$16 sps:$4 sm:$0xff]  }
 0x23c   :  { %3177 = vmatpush1.bf16.msra.mxu0 %v5904_v36  ;;  %3323 = vmatpush1.bf16.msra.mxu1 %v5907_v38  ;;  %v5994_v36 = vld [vmem:[#allocation8 + $0x160] ss:$16 sps:$4 sm:$0xff]   ;;  %v5997_v38 = vld [vmem:[#allocation8 + $0x168] ss:$16 sps:$4 sm:$0xff]  }
 0x23d   :  { %3178 = vmatprep.subr.bf16.mxu0 %v5912_v39  ;;  %3324 = vmatprep.subr.bf16.mxu1 %v5915_v40  ;;  %v6002_v39 = vld [vmem:[#allocation8 + $0x184] ss:$16 sps:$4 sm:$0xff]   ;;  %v6005_v40 = vld [vmem:[#allocation8 + $0x18c] ss:$16 sps:$4 sm:$0xff]  }
 0x240   :  { %3179 = vmatpush1.bf16.msra.mxu0 %v5910_v41  ;;  %3325 = vmatpush1.bf16.msra.mxu1 %v5913_v42  ;;  %v6000_v41 = vld [vmem:[#allocation8 + $0x180] ss:$16 sps:$4 sm:$0xff]   ;;  %v6003_v42 = vld [vmem:[#allocation8 + $0x188] ss:$16 sps:$4 sm:$0xff]  }
 0x241   :  { %3180 = vmatprep.subr.bf16.mxu0 %v5918_v43  ;;  %3326 = vmatprep.subr.bf16.mxu1 %v5921_v44  ;;  %v6008_v43 = vld [vmem:[#allocation8 + $0x1a4] ss:$16 sps:$4 sm:$0xff]   ;;  %v6011_v44 = vld [vmem:[#allocation8 + $0x1ac] ss:$16 sps:$4 sm:$0xff]  }
 0x244   :  { %3181 = vmatpush1.bf16.msra.mxu0 %v5916_v46  ;;  %3327 = vmatpush1.bf16.msra.mxu1 %v5919_v47  ;;  %v6006_v46 = vld [vmem:[#allocation8 + $0x1a0] ss:$16 sps:$4 sm:$0xff]   ;;  %v6009_v47 = vld [vmem:[#allocation8 + $0x1a8] ss:$16 sps:$4 sm:$0xff]  }
 0x245   :  { %3182 = vmatprep.subr.bf16.mxu0 %v5924_v48  ;;  %3328 = vmatprep.subr.bf16.mxu1 %v5927_v49  ;;  %v6014_v48 = vld [vmem:[#allocation8 + $0x1c4] ss:$16 sps:$4 sm:$0xff]   ;;  %v6017_v49 = vld [vmem:[#allocation8 + $0x1cc] ss:$16 sps:$4 sm:$0xff]  }
 0x248   :  { %3183 = vmatpush1.bf16.msra.mxu0 %v5922_v50  ;;  %3329 = vmatpush1.bf16.msra.mxu1 %v5925_v6  ;;  %v6012_v50 = vld [vmem:[#allocation8 + $0x1c0] ss:$16 sps:$4 sm:$0xff]   ;;  %v6015_v6 = vld [vmem:[#allocation8 + $0x1c8] ss:$16 sps:$4 sm:$0xff]  }
 0x249   :  { %4241 = vmatprep.subr.bf16.mxu0 %v5930_v7  ;;  %4387 = vmatprep.subr.bf16.mxu1 %v5933_v51  ;;  %v6020_v7 = vld [vmem:[#allocation8 + $0x1e4] ss:$16 sps:$4 sm:$0xff]   ;;  %v6023_v51 = vld [vmem:[#allocation8 + $0x1ec] ss:$16 sps:$4 sm:$0xff]  }
 0x24b   :  { %3185 = vmatmul.mubr.bf16.vlgmr.msra.gmra.mrb[16].mxu0 %v6385_v45  ;;  %3331 = vmatmul.mubr.bf16.vlgmr.msra.gmra.mrb[16].mxu1 %v6385_v45  ;;  %v5951_v45 = vld [vmem:[#allocation8 + $0x6c] ss:$16 sps:$4 sm:$0xff]  }
 0x24c   :  { %3194 = vmatprep.mubr.bf16.mxu0 %v6436_v14  ;;  %3340 = vmatprep.mubr.bf16.mxu1 %v6436_v14  ;;  %v5946_v14 = vld [vmem:[#allocation8 + $0x60] ss:$16 sps:$4 sm:$0xff]  }
 0x24d   :  { %4242 = vmatpush1.bf16.msra.mxu0 %v5928_v52  ;;  %4388 = vmatpush1.bf16.msra.mxu1 %v5931_v54  ;;  %v6018_v52 = vld [vmem:[#allocation8 + $0x1e0] ss:$16 sps:$4 sm:$0xff]   ;;  %v6021_v54 = vld [vmem:[#allocation8 + $0x1e8] ss:$16 sps:$4 sm:$0xff]  }
 0x24e   :  { %4243 = vmatprep.subr.bf16.mxu0 %v5936_v55  ;;  %4389 = vmatprep.subr.bf16.mxu1 %v5939_v56  ;;  %v6026_v55 = vld [vmem:[#allocation8 + $0x204] ss:$16 sps:$4 sm:$0xff]   ;;  %v6029_v56 = vld [vmem:[#allocation8 + $0x20c] ss:$16 sps:$4 sm:$0xff]  }
 0x251   :  { %4244 = vmatpush1.bf16.msra.mxu0 %v5934_v8  ;;  %4390 = vmatpush1.bf16.msra.mxu1 %v5937_v9  ;;  %v2417_v8 = vld [vmem:[%s6651_s4] sm:$0xf] }
 0x252   :  { %4245 = vmatprep.subr.bf16.mxu0 %v5942_v57  ;;  %4391 = vmatprep.subr.bf16.mxu1 %v5945_v53  ;;  %v6479_v9 = vrot.slane %v2417_v8, %v6354_v1  ;;  %v6482_v57 = vrot.slane %v2417_v8, %v6356_v2  ;;  %v6485_v53 = vrot.slane %v2417_v8, %v6361_v4 }
 0x253   :  { %3195 = vmatmul.mubr.bf16.gmra.mrb[20].mxu0 %v6411_v37  ;;  %3341 = vmatmul.mubr.bf16.gmra.mrb[20].mxu1 %v6411_v37  ;;  %v5963_v37 = vld [vmem:[#allocation8 + $0xac] ss:$16 sps:$4 sm:$0xff]  }
 0x254   :  { %3204 = vmatprep.mubr.bf16.mxu0 %v6453_v59  ;;  %3350 = vmatprep.mubr.bf16.mxu1 %v6453_v59  ;;  %v5958_v59 = vld [vmem:[#allocation8 + $0xa0] ss:$16 sps:$4 sm:$0xff]  }
 0x255   :  { %4246 = vmatpush1.bf16.msra.mxu0 %v5940_v60  ;;  %4392 = vmatpush1.bf16.msra.mxu1 %v5943_v61  ;;  %v6488_v60 = vrot.slane %v2417_v8, %v6363_v5 }
 0x256   :  { %4247 = vmatprep.subr.bf16.mxu0 %v5948_v62  ;;  %4393 = vmatprep.subr.bf16.mxu1 %v5951_v45 }
 0x259   :  { %4248 = vmatpush1.bf16.msra.mxu0 %v5946_v14  ;;  %4394 = vmatpush1.bf16.msra.mxu1 %v5949_v63 }
 0x25a   :  { %4249 = vmatprep.subr.bf16.mxu0 %v5954_v3  ;;  %4395 = vmatprep.subr.bf16.mxu1 %v5957_v11 }
 0x25b   :  { %3205 = vmatmul.mubr.bf16.gmra.mrb[24].mxu0 %v6444_v28  ;;  %3351 = vmatmul.mubr.bf16.gmra.mrb[24].mxu1 %v6444_v28  ;;  %v5975_v28 = vld [vmem:[#allocation8 + $0xec] ss:$16 sps:$4 sm:$0xff]  }
 0x25c   :  { %3214 = vmatprep.mubr.bf16.mxu0 %v6457_v10  ;;  %3360 = vmatprep.mubr.bf16.mxu1 %v6457_v10  ;;  %v5970_v10 = vld [vmem:[#allocation8 + $0xe0] ss:$16 sps:$4 sm:$0xff]  }
 0x25d   :  { %4250 = vmatpush1.bf16.msra.mxu0 %v5952_v12  ;;  %4396 = vmatpush1.bf16.msra.mxu1 %v5955_v13 }
 0x25e   :  { %4251 = vmatprep.subr.bf16.mxu0 %v5960_v15  ;;  %4397 = vmatprep.subr.bf16.mxu1 %v5963_v37 }
 0x261   :  { %4252 = vmatpush1.bf16.msra.mxu0 %v5958_v59  ;;  %4398 = vmatpush1.bf16.msra.mxu1 %v5961_v16 }
 0x262   :  { %4253 = vmatprep.subr.bf16.mxu0 %v5966_v17  ;;  %4399 = vmatprep.subr.bf16.mxu1 %v5969_v18 }
 0x263   :  { %3215 = vmatmul.mubr.bf16.gmra.mrb[28].mxu0 %v6455_v0  ;;  %3361 = vmatmul.mubr.bf16.gmra.mrb[28].mxu1 %v6455_v0  ;;  %v5985_v0 = vld [vmem:[#allocation8 + $0x128] ss:$16 sps:$4 sm:$0xff]  }
 0x265   :  { %4254 = vmatpush1.bf16.msra.mxu0 %v5964_v19  ;;  %4400 = vmatpush1.bf16.msra.mxu1 %v5967_v20 }
 0x266   :  { %4255 = vmatprep.subr.bf16.mxu0 %v5972_v21  ;;  %4401 = vmatprep.subr.bf16.mxu1 %v5975_v28 }
 0x269   :  { %4256 = vmatpush1.bf16.msra.mxu0 %v5970_v10  ;;  %4402 = vmatpush1.bf16.msra.mxu1 %v5973_v22 }
 0x26a   :  { %4257 = vmatprep.subr.bf16.mxu0 %v5978_v23  ;;  %4403 = vmatprep.subr.bf16.mxu1 %v5981_v24 }
 0x26d   :  { %4258 = vmatpush1.bf16.msra.mxu0 %v5976_v25  ;;  %4404 = vmatpush1.bf16.msra.mxu1 %v5979_v26 }
 0x26e   :  { %4259 = vmatprep.subr.bf16.mxu0 %v5984_v58  ;;  %4405 = vmatprep.subr.bf16.mxu1 %v5987_v27 }
 0x271   :  { %4260 = vmatpush1.bf16.msra.mxu0 %v5982_v29  ;;  %4406 = vmatpush1.bf16.msra.mxu1 %v5985_v0 }
 0x272   :  { %4261 = vmatprep.subr.bf16.mxu0 %v5990_v30  ;;  %4407 = vmatprep.subr.bf16.mxu1 %v5993_v31 }
 0x275   :  { %4262 = vmatpush1.bf16.msra.mxu0 %v5988_v32  ;;  %4408 = vmatpush1.bf16.msra.mxu1 %v5991_v33 }
 0x276   :  { %4263 = vmatprep.subr.bf16.mxu0 %v5996_v34  ;;  %4409 = vmatprep.subr.bf16.mxu1 %v5999_v35 }
 0x279   :  { %4264 = vmatpush1.bf16.msra.mxu0 %v5994_v36  ;;  %4410 = vmatpush1.bf16.msra.mxu1 %v5997_v38 }
 0x27a   :  { %4265 = vmatprep.subr.bf16.mxu0 %v6002_v39  ;;  %4411 = vmatprep.subr.bf16.mxu1 %v6005_v40 }
 0x27d   :  { %4266 = vmatpush1.bf16.msra.mxu0 %v6000_v41  ;;  %4412 = vmatpush1.bf16.msra.mxu1 %v6003_v42  ;;  %v6024_v42 = vld [vmem:[#allocation8 + $0x200] ss:$16 sps:$4 sm:$0xff]  }
 0x27e   :  { %4267 = vmatprep.subr.bf16.mxu0 %v6008_v43  ;;  %4413 = vmatprep.subr.bf16.mxu1 %v6011_v44  ;;  %v6027_v43 = vld [vmem:[#allocation8 + $0x208] ss:$16 sps:$4 sm:$0xff]  }
 0x281   :  { %4268 = vmatpush1.bf16.msra.mxu0 %v6006_v46  ;;  %4414 = vmatpush1.bf16.msra.mxu1 %v6009_v47 }
 0x282   :  { %4269 = vmatprep.subr.bf16.mxu0 %v6014_v48  ;;  %4415 = vmatprep.subr.bf16.mxu1 %v6017_v49  ;;  %v6032_v49 = vld [vmem:[#allocation8 + $0x224] ss:$16 sps:$4 sm:$0xff]  }
 0x285   :  { %4270 = vmatpush1.bf16.msra.mxu0 %v6012_v50  ;;  %4416 = vmatpush1.bf16.msra.mxu1 %v6015_v6  ;;  %v6035_v50 = vld [vmem:[#allocation8 + $0x22c] ss:$16 sps:$4 sm:$0xff]  }
 0x286   :  { %4271 = vmatprep.subr.bf16.mxu0 %v6020_v7  ;;  %4417 = vmatprep.subr.bf16.mxu1 %v6023_v51 }
 0x289   :  { %4272 = vmatpush1.bf16.msra.mxu0 %v6018_v52  ;;  %4418 = vmatpush1.bf16.msra.mxu1 %v6021_v54 }
 0x28a   :  { %4314 = vmatprep.subr.bf16.mxu0 %v6026_v55  ;;  %4460 = vmatprep.subr.bf16.mxu1 %v6029_v56 }
 0x31e   :  { %v3186_v61 = vpop.f32.mrb[16].mxu0  ;;  %v3332_v62 = vpop.f32.mrb[16].mxu1 }
 0x31f   :  { %v5124_v45 = vadd.f32 %v3186_v61, %v6479_v9  ;;  %v5140_v14 = vadd.f32 %v3332_v62, %v6482_v57  ;;  %v3188_v63 = vpop.f32.mrb[17].mxu0  ;;  %v3334_v3 = vpop.f32.mrb[17].mxu1 }
 0x320   :  { %v5125_v11 = vadd.f32 %v3188_v63, %v6485_v53  ;;  %v5141_v12 = vadd.f32 %v3334_v3, %v6488_v60  ;;  %v3190_v13 = vpop.f32.mrb[18].mxu0  ;;  %v3336_v15 = vpop.f32.mrb[18].mxu1  ;;  %v6030_v3 = vld [vmem:[#allocation8 + $0x220] ss:$16 sps:$4 sm:$0xff]  }
 0x321   :  { %v3371_v37 = vmul.f32 0.2, %v5124_v45  ;;  %v3373_v59 = vmul.f32 0.2, %v5140_v14  ;;  %v5126_v16 = vadd.f32 %v3190_v13, %v6479_v9  ;;  %v5142_v17 = vadd.f32 %v3336_v15, %v6482_v57  ;;  %v3192_v18 = vpop.f32.mrb[19].mxu0  ;;  %v3338_v19 = vpop.f32.mrb[19].mxu1 }
 0x322   :  { %v3372_v20 = vmul.f32 0.2, %v5125_v11  ;;  %v3374_v21 = vmul.f32 0.2, %v5141_v12  ;;  %v5127_v28 = vadd.f32 %v3192_v18, %v6485_v53  ;;  %v5143_v10 = vadd.f32 %v3338_v19, %v6488_v60  ;;  %v6033_v15 = vld [vmem:[#allocation8 + $0x228] ss:$16 sps:$4 sm:$0xff]  }
 0x323   :  { %v3375_v22 = vmul.f32 0.2, %v5126_v16  ;;  %v3377_v23 = vmul.f32 0.2, %v5142_v17  ;;  %v3403_v26 = vmax.f32 %v5124_v45, %v3371_v37  ;;  %v3405_v58 = vmax.f32 %v5140_v14, %v3373_v59  ;;  %v6041_v18 = vld [vmem:[#allocation8 + $0x24c] ss:$16 sps:$4 sm:$0xff]  }
 0x324   :  { %v3376_v24 = vmul.f32 0.2, %v5127_v28  ;;  %v3378_v25 = vmul.f32 0.2, %v5143_v10  ;;  %v3404_v0 = vmax.f32 %v5125_v11, %v3372_v20  ;;  %v3406_v30 = vmax.f32 %v5141_v12, %v3374_v21 }
 0x325   :  { %v3407_v27 = vmax.f32 %v5126_v16, %v3375_v22  ;;  %v3409_v29 = vmax.f32 %v5142_v17, %v3377_v23  ;;  %v6038_v17 = vld [vmem:[#allocation8 + $0x244] ss:$16 sps:$4 sm:$0xff]  }
 0x326   :  { %v3408_v31 = vmax.f32 %v5127_v28, %v3376_v24  ;;  %v3410_v32 = vmax.f32 %v5143_v10, %v3378_v25  ;;  %v3196_v33 = vpop.f32.mrb[20].mxu0  ;;  %v3342_v34 = vpop.f32.mrb[20].mxu1 }
 0x327   :  { %v3435_v35 = vpack.c.bf16 %v3407_v27, %v3403_v26  ;;  %v6498_v36 = vpack.c.bf16 %v3409_v29, %v3405_v58  ;;  %v5128_v38 = vadd.f32 %v3196_v33, %v6479_v9  ;;  %v5144_v39 = vadd.f32 %v3342_v34, %v6482_v57  ;;  %v3198_v40 = vpop.f32.mrb[21].mxu0  ;;  %v3344_v41 = vpop.f32.mrb[21].mxu1  ;;  %v6036_v26 = vld [vmem:[#allocation8 + $0x240] ss:$16 sps:$4 sm:$0xff]   ;;  %v6039_v58 = vld [vmem:[#allocation8 + $0x248] ss:$16 sps:$4 sm:$0xff]  }
 0x328   :  { %v5129_v44 = vadd.f32 %v3198_v40, %v6485_v53  ;;  %v3200_v46 = vpop.f32.mrb[22].mxu0  ;;  %v3346_v47 = vpop.f32.mrb[22].mxu1  ;;  %v3436_v48 = vpack.c.bf16 %v3408_v31, %v3404_v0  ;;  %v6503_v6 = vpack.c.bf16 %v3410_v32, %v3406_v30  ;;  %v6508_v61 = vadd.f32 %v3344_v41, %v6488_v60  ;;  %v6044_v34 = vld [vmem:[#allocation8 + $0x264] ss:$16 sps:$4 sm:$0xff]  }
 0x329   :  { %v3379_v7 = vmul.f32 0.2, %v5128_v38  ;;  %v3381_v51 = vmul.f32 0.2, %v5144_v39  ;;  %v5130_v52 = vadd.f32 %v3200_v46, %v6479_v9  ;;  %v5146_v54 = vadd.f32 %v3346_v47, %v6482_v57  ;;  %v3202_v55 = vpop.f32.mrb[23].mxu0  ;;  %v3348_v56 = vpop.f32.mrb[23].mxu1 }
 0x32a   :  { %v3380_v8 = vmul.f32 0.2, %v5129_v44  ;;  %v5131_v62 = vadd.f32 %v3202_v55, %v6485_v53  ;;  %v6512_v45 = vadd.f32 %v3348_v56, %v6488_v60  ;;  %4273 = vmatprep.mubr.bf16.mxu0 %v3436_v48  ;;  %4419 = vmatprep.mubr.bf16.mxu1 %v3436_v48  ;;  %v3382_v20 = vmul.f32 0.2, %v6508_v61 }
 0x32b   :  { %v3383_v14 = vmul.f32 0.2, %v5130_v52  ;;  %v3385_v63 = vmul.f32 0.2, %v5146_v54  ;;  %4274 = vmatmul.mubr.bf16.vlgmr.msra.gmra.mrb[32].mxu0 %v3435_v35  ;;  %4420 = vmatmul.mubr.bf16.vlgmr.msra.gmra.mrb[32].mxu1 %v3435_v35  ;;  %v3411_v11 = vmax.f32 %v5128_v38, %v3379_v7  ;;  %v3413_v37 = vmax.f32 %v5144_v39, %v3381_v51  ;;  %v6047_v35 = vld [vmem:[#allocation8 + $0x26c] ss:$16 sps:$4 sm:$0xff]  }
 0x32c   :  { %v3384_v12 = vmul.f32 0.2, %v5131_v62  ;;  %v6515_v13 = vmul.f32 0.2, %v6512_v45  ;;  %4315 = vmatpush1.bf16.msra.mxu0 %v6024_v42  ;;  %4461 = vmatpush1.bf16.msra.mxu1 %v6027_v43  ;;  %v3412_v19 = vmax.f32 %v5129_v44, %v3380_v8  ;;  %v6042_v51 = vld [vmem:[#allocation8 + $0x260] ss:$16 sps:$4 sm:$0xff]  }
 0x32d   :  { %v3415_v59 = vmax.f32 %v5130_v52, %v3383_v14  ;;  %v3417_v16 = vmax.f32 %v5146_v54, %v3385_v63  ;;  %4316 = vmatprep.subr.bf16.mxu0 %v6032_v49  ;;  %4462 = vmatprep.subr.bf16.mxu1 %v6035_v50  ;;  %v3414_v49 = vmax.f32 %v6508_v61, %v3382_v20  ;;  %v6045_v8 = vld [vmem:[#allocation8 + $0x268] ss:$16 sps:$4 sm:$0xff]   ;;  %v6050_v61 = vld [vmem:[#allocation8 + $0x284] ss:$16 sps:$4 sm:$0xff]   ;;  %v6053_v14 = vld [vmem:[#allocation8 + $0x28c] ss:$16 sps:$4 sm:$0xff]  }
 0x32e   :  { %v3416_v21 = vmax.f32 %v5131_v62, %v3384_v12  ;;  %v3206_v28 = vpop.f32.mrb[24].mxu0  ;;  %v3352_v10 = vpop.f32.mrb[24].mxu1  ;;  %v3418_v0 = vmax.f32 %v6512_v45, %v6515_v13  ;;  %v6051_v20 = vld [vmem:[#allocation8 + $0x288] ss:$16 sps:$4 sm:$0xff]  }
 0x32f   :  { %v6519_v22 = vadd.f32 %v3206_v28, %v6479_v9  ;;  %v6522_v23 = vadd.f32 %v3352_v10, %v6482_v57  ;;  %v3208_v24 = vpop.f32.mrb[25].mxu0  ;;  %v3354_v25 = vpop.f32.mrb[25].mxu1  ;;  %v3439_v27 = vpack.c.bf16 %v3415_v59, %v3411_v11  ;;  %v6524_v29 = vpack.c.bf16 %v3417_v16, %v3413_v37 }
 0x330   :  { %v6529_v30 = vadd.f32 %v3208_v24, %v6485_v53  ;;  %4317 = vmatpush1.bf16.msra.mxu0 %v6030_v3  ;;  %4463 = vmatpush1.bf16.msra.mxu1 %v6033_v15  ;;  %v3210_v31 = vpop.f32.mrb[26].mxu0  ;;  %v3356_v32 = vpop.f32.mrb[26].mxu1  ;;  %v3440_v33 = vpack.c.bf16 %v3416_v21, %v3412_v19  ;;  %v6537_v46 = vadd.f32 %v3354_v25, %v6488_v60  ;;  %v6048_v19 = vld [vmem:[#allocation8 + $0x280] ss:$16 sps:$4 sm:$0xff]  }
 0x331   :  { %v3387_v38 = vmul.f32 0.2, %v6519_v22  ;;  %v3389_v39 = vmul.f32 0.2, %v6522_v23  ;;  %v5134_v40 = vadd.f32 %v3210_v31, %v6479_v9  ;;  %v5150_v41 = vadd.f32 %v3356_v32, %v6482_v57  ;;  %v3212_v42 = vpop.f32.mrb[27].mxu0  ;;  %v3358_v43 = vpop.f32.mrb[27].mxu1  ;;  %4318 = vmatprep.subr.bf16.mxu0 %v6038_v17  ;;  %4464 = vmatprep.subr.bf16.mxu1 %v6041_v18 }
 0x332   :  { %v3388_v44 = vmul.f32 0.2, %v6529_v30  ;;  %v5135_v47 = vadd.f32 %v3212_v42, %v6485_v53  ;;  %v6541_v48 = vadd.f32 %v3358_v43, %v6488_v60  ;;  %4283 = vmatprep.mubr.bf16.mxu0 %v3440_v33  ;;  %4429 = vmatprep.mubr.bf16.mxu1 %v3440_v33  ;;  %v6549_v63 = vpack.c.bf16 %v3418_v0, %v3414_v49 }
 0x333   :  { %v3391_v50 = vmul.f32 0.2, %v5134_v40  ;;  %v3393_v7 = vmul.f32 0.2, %v5150_v41  ;;  %4284 = vmatmul.mubr.bf16.gmra.mrb[36].mxu0 %v3439_v27  ;;  %4430 = vmatmul.mubr.bf16.gmra.mrb[36].mxu1 %v3439_v27  ;;  %v3419_v52 = vmax.f32 %v6519_v22, %v3387_v38  ;;  %v3421_v54 = vmax.f32 %v6522_v23, %v3389_v39 }
 0x334   :  { %v3392_v55 = vmul.f32 0.2, %v5135_v47  ;;  %v6547_v56 = vmul.f32 0.2, %v6541_v48  ;;  %4319 = vmatpush1.bf16.msra.mxu0 %v6036_v26  ;;  %4465 = vmatpush1.bf16.msra.mxu1 %v6039_v58  ;;  %v3420_v3 = vmax.f32 %v6529_v30, %v3388_v44  ;;  %v3390_v11 = vmul.f32 0.2, %v6537_v46 }
 0x335   :  { %v3423_v62 = vmax.f32 %v5134_v40, %v3391_v50  ;;  %v3425_v45 = vmax.f32 %v5150_v41, %v3393_v7  ;;  %4320 = vmatprep.subr.bf16.mxu0 %v6044_v34  ;;  %4466 = vmatprep.subr.bf16.mxu1 %v6047_v35  ;;  %v6056_v26 = vld [vmem:[#allocation8 + $0x2a4] ss:$16 sps:$4 sm:$0xff]   ;;  %v6059_v58 = vld [vmem:[#allocation8 + $0x2ac] ss:$16 sps:$4 sm:$0xff]  }
 0x336   :  { %v3424_v12 = vmax.f32 %v5135_v47, %v3392_v55  ;;  %v3426_v13 = vmax.f32 %v6541_v48, %v6547_v56  ;;  %v3216_v15 = vpop.f32.mrb[28].mxu0  ;;  %v3362_v37 = vpop.f32.mrb[28].mxu1  ;;  %v3422_v40 = vmax.f32 %v6537_v46, %v3390_v11  ;;  %v6057_v48 = vld [vmem:[#allocation8 + $0x2a8] ss:$16 sps:$4 sm:$0xff]   ;;  %v6065_v50 = vld [vmem:[#allocation8 + $0x2cc] ss:$16 sps:$4 sm:$0xff]  }
 0x337   :  { %v5136_v59 = vadd.f32 %v3216_v15, %v6479_v9  ;;  %v5152_v16 = vadd.f32 %v3362_v37, %v6482_v57  ;;  %v3218_v17 = vpop.f32.mrb[29].mxu0  ;;  %v3364_v18 = vpop.f32.mrb[29].mxu1  ;;  %v3443_v21 = vpack.c.bf16 %v3423_v62, %v3419_v52  ;;  %v6557_v28 = vpack.c.bf16 %v3425_v45, %v3421_v54  ;;  %v6060_v62 = vld [vmem:[#allocation8 + $0x2c0] ss:$16 sps:$4 sm:$0xff]   ;;  %v6063_v45 = vld [vmem:[#allocation8 + $0x2c8] ss:$16 sps:$4 sm:$0xff]  }
 0x338   :  { %v5137_v10 = vadd.f32 %v3218_v17, %v6485_v53  ;;  %v5153_v22 = vadd.f32 %v3364_v18, %v6488_v60  ;;  %4321 = vmatpush1.bf16.msra.mxu0 %v6042_v51  ;;  %4467 = vmatpush1.bf16.msra.mxu1 %v6045_v8  ;;  %v3220_v23 = vpop.f32.mrb[30].mxu0  ;;  %v3366_v24 = vpop.f32.mrb[30].mxu1  ;;  %v3444_v25 = vpack.c.bf16 %v3424_v12, %v3420_v3  ;;  %v6071_v3 = vld [vmem:[#allocation8 + $0x2ec] ss:$16 sps:$4 sm:$0xff]   ;;  %v6066_v11 = vld [vmem:[#allocation8 + $0x2e0] ss:$16 sps:$4 sm:$0xff]  }
 0x339   :  { %v3395_v27 = vmul.f32 0.2, %v5136_v59  ;;  %v3397_v0 = vmul.f32 0.2, %v5152_v16  ;;  %v5138_v30 = vadd.f32 %v3220_v23, %v6479_v9  ;;  %v5154_v31 = vadd.f32 %v3366_v24, %v6482_v57  ;;  %v3222_v32 = vpop.f32.mrb[31].mxu0  ;;  %v3368_v33 = vpop.f32.mrb[31].mxu1  ;;  %4322 = vmatprep.subr.bf16.mxu0 %v6050_v61  ;;  %4468 = vmatprep.subr.bf16.mxu1 %v6053_v14 }
 0x33a   :  { %v3396_v34 = vmul.f32 0.2, %v5137_v10  ;;  %v3398_v35 = vmul.f32 0.2, %v5153_v22  ;;  %v5139_v38 = vadd.f32 %v3222_v32, %v6485_v53  ;;  %v5155_v39 = vadd.f32 %v3368_v33, %v6488_v60  ;;  %4293 = vmatprep.mubr.bf16.mxu0 %v3444_v25  ;;  %4439 = vmatprep.mubr.bf16.mxu1 %v3444_v25  ;;  %v6054_v9 = vld [vmem:[#allocation8 + $0x2a0] ss:$16 sps:$4 sm:$0xff]  }
 0x33b   :  { %v3399_v41 = vmul.f32 0.2, %v5138_v30  ;;  %v3401_v42 = vmul.f32 0.2, %v5154_v31  ;;  %4294 = vmatmul.mubr.bf16.gmra.mrb[40].mxu0 %v3443_v21  ;;  %4440 = vmatmul.mubr.bf16.gmra.mrb[40].mxu1 %v3443_v21  ;;  %v3427_v57 = vmax.f32 %v5136_v59, %v3395_v27  ;;  %v3429_v43 = vmax.f32 %v5152_v16, %v3397_v0  ;;  %v6062_v60 = vld [vmem:[#allocation8 + $0x2c4] ss:$16 sps:$4 sm:$0xff]  }
 0x33c   :  { %v3400_v44 = vmul.f32 0.2, %v5139_v38  ;;  %v3402_v47 = vmul.f32 0.2, %v5155_v39  ;;  %4323 = vmatpush1.bf16.msra.mxu0 %v6048_v19  ;;  %4469 = vmatpush1.bf16.msra.mxu1 %v6051_v20  ;;  %v6566_v7 = vpack.c.bf16 %v3426_v13, %v3422_v40  ;;  %v3428_v46 = vmax.f32 %v5137_v10, %v3396_v34  ;;  %v6068_v14 = vld [vmem:[#allocation8 + $0x2e4] ss:$16 sps:$4 sm:$0xff]  }
 0x33d   :  { %v3431_v49 = vmax.f32 %v5138_v30, %v3399_v41  ;;  %v3433_v53 = vmax.f32 %v5154_v31, %v3401_v42  ;;  %4324 = vmatprep.subr.bf16.mxu0 %v6056_v26  ;;  %4470 = vmatprep.subr.bf16.mxu1 %v6059_v58  ;;  %v3430_v51 = vmax.f32 %v5153_v22, %v3398_v35  ;;  %v6069_v12 = vld [vmem:[#allocation8 + $0x2e8] ss:$16 sps:$4 sm:$0xff]   ;;  %v6074_v13 = vld [vmem:[#allocation8 + $0x304] ss:$16 sps:$4 sm:$0xff]   ;;  %v6077_v15 = vld [vmem:[#allocation8 + $0x30c] ss:$16 sps:$4 sm:$0xff]  }
 0x33e   :  { %v3432_v52 = vmax.f32 %v5139_v38, %v3400_v44  ;;  %v3434_v54 = vmax.f32 %v5155_v39, %v3402_v47  ;;  %v6072_v37 = vld [vmem:[#allocation8 + $0x300] ss:$16 sps:$4 sm:$0xff]   ;;  %v6075_v59 = vld [vmem:[#allocation8 + $0x308] ss:$16 sps:$4 sm:$0xff]   ;;  %v6080_v16 = vld [vmem:[#allocation8 + $0x324] ss:$16 sps:$4 sm:$0xff]  }
 0x33f   :  { %v3447_v55 = vpack.c.bf16 %v3431_v49, %v3427_v57  ;;  %v6568_v56 = vpack.c.bf16 %v3433_v53, %v3429_v43  ;;  %v6083_v17 = vld [vmem:[#allocation8 + $0x32c] ss:$16 sps:$4 sm:$0xff]   ;;  %v6078_v18 = vld [vmem:[#allocation8 + $0x320] ss:$16 sps:$4 sm:$0xff]   ;;  %v6081_v19 = vld [vmem:[#allocation8 + $0x328] ss:$16 sps:$4 sm:$0xff]  }
 0x340   :  { %4325 = vmatpush1.bf16.msra.mxu0 %v6054_v9  ;;  %4471 = vmatpush1.bf16.msra.mxu1 %v6057_v48  ;;  %v3448_v8 = vpack.c.bf16 %v3432_v52, %v3428_v46  ;;  %v6570_v61 = vpack.c.bf16 %v3434_v54, %v3430_v51  ;;  %v6086_v20 = vld [vmem:[#allocation8 + $0x344] ss:$16 sps:$4 sm:$0xff]   ;;  %v6084_v21 = vld [vmem:[#allocation8 + $0x340] ss:$16 sps:$4 sm:$0xff]   ;;  %v6087_v10 = vld [vmem:[#allocation8 + $0x348] ss:$16 sps:$4 sm:$0xff]  }
 0x341   :  { %4326 = vmatprep.subr.bf16.mxu0 %v6062_v60  ;;  %4472 = vmatprep.subr.bf16.mxu1 %v6065_v50  ;;  %v6092_v22 = vld [vmem:[#allocation8 + $0x364] ss:$16 sps:$4 sm:$0xff]   ;;  %v6095_v23 = vld [vmem:[#allocation8 + $0x36c] ss:$16 sps:$4 sm:$0xff]   ;;  %v6090_v24 = vld [vmem:[#allocation8 + $0x360] ss:$16 sps:$4 sm:$0xff]  }
 0x342   :  { %4303 = vmatprep.mubr.bf16.mxu0 %v3448_v8  ;;  %4449 = vmatprep.mubr.bf16.mxu1 %v3448_v8  ;;  %v6093_v25 = vld [vmem:[#allocation8 + $0x368] ss:$16 sps:$4 sm:$0xff]   ;;  %v6098_v26 = vld [vmem:[#allocation8 + $0x384] ss:$16 sps:$4 sm:$0xff]   ;;  %v6101_v58 = vld [vmem:[#allocation8 + $0x38c] ss:$16 sps:$4 sm:$0xff]  }
 0x343   :  { %4304 = vmatmul.mubr.bf16.gmra.mrb[44].mxu0 %v3447_v55  ;;  %4450 = vmatmul.mubr.bf16.gmra.mrb[44].mxu1 %v3447_v55  ;;  %v6096_v27 = vld [vmem:[#allocation8 + $0x380] ss:$16 sps:$4 sm:$0xff]   ;;  %v6099_v0 = vld [vmem:[#allocation8 + $0x388] ss:$16 sps:$4 sm:$0xff]   ;;  %v6104_v30 = vld [vmem:[#allocation8 + $0x3a4] ss:$16 sps:$4 sm:$0xff]  }
 0x344   :  { %4327 = vmatpush1.bf16.msra.mxu0 %v6060_v62  ;;  %4473 = vmatpush1.bf16.msra.mxu1 %v6063_v45  ;;  %v6107_v31 = vld [vmem:[#allocation8 + $0x3ac] ss:$16 sps:$4 sm:$0xff]   ;;  %v6102_v32 = vld [vmem:[#allocation8 + $0x3a0] ss:$16 sps:$4 sm:$0xff]   ;;  %v6105_v33 = vld [vmem:[#allocation8 + $0x3a8] ss:$16 sps:$4 sm:$0xff]  }
 0x345   :  { %4346 = vmatprep.mubr.bf16.mxu0 %v6503_v6  ;;  %4492 = vmatprep.mubr.bf16.mxu1 %v6503_v6  ;;  %v6089_v6 = vld [vmem:[#allocation8 + $0x34c] ss:$16 sps:$4 sm:$0xff]   ;;  %v6110_v34 = vld [vmem:[#allocation8 + $0x3c4] ss:$16 sps:$4 sm:$0xff]   ;;  %v6108_v38 = vld [vmem:[#allocation8 + $0x3c0] ss:$16 sps:$4 sm:$0xff]  }
 0x346   :  { %4328 = vmatprep.subr.bf16.mxu0 %v6068_v14  ;;  %4474 = vmatprep.subr.bf16.mxu1 %v6071_v3  ;;  %v6113_v35 = vld [vmem:[#allocation8 + $0x3cc] ss:$16 sps:$4 sm:$0xff]   ;;  %v6111_v39 = vld [vmem:[#allocation8 + $0x3c8] ss:$16 sps:$4 sm:$0xff]   ;;  %v6116_v40 = vld [vmem:[#allocation8 + $0x3e4] ss:$16 sps:$4 sm:$0xff]  }
 0x347   :  { %v6119_v41 = vld [vmem:[#allocation8 + $0x3ec] ss:$16 sps:$4 sm:$0xff]   ;;  %v6114_v42 = vld [vmem:[#allocation8 + $0x3e0] ss:$16 sps:$4 sm:$0xff]   ;;  %v6117_v9 = vld [vmem:[#allocation8 + $0x3e8] ss:$16 sps:$4 sm:$0xff]  }
 0x348   :  { %4329 = vmatpush1.bf16.msra.mxu0 %v6066_v11  ;;  %4475 = vmatpush1.bf16.msra.mxu1 %v6069_v12 }
 0x349   :  { %4330 = vmatprep.subr.bf16.mxu0 %v6074_v13  ;;  %4476 = vmatprep.subr.bf16.mxu1 %v6077_v15 }
 0x34c   :  { %4331 = vmatpush1.bf16.msra.mxu0 %v6072_v37  ;;  %4477 = vmatpush1.bf16.msra.mxu1 %v6075_v59 }
 0x34d   :  { %4332 = vmatprep.subr.bf16.mxu0 %v6080_v16  ;;  %4478 = vmatprep.subr.bf16.mxu1 %v6083_v17 }
 0x350   :  { %4333 = vmatpush1.bf16.msra.mxu0 %v6078_v18  ;;  %4479 = vmatpush1.bf16.msra.mxu1 %v6081_v19 }
 0x351   :  { %4334 = vmatprep.subr.bf16.mxu0 %v6086_v20  ;;  %4480 = vmatprep.subr.bf16.mxu1 %v6089_v6 }
 0x354   :  { %4335 = vmatpush1.bf16.msra.mxu0 %v6084_v21  ;;  %4481 = vmatpush1.bf16.msra.mxu1 %v6087_v10 }
 0x355   :  { %4336 = vmatprep.subr.bf16.mxu0 %v6092_v22  ;;  %4482 = vmatprep.subr.bf16.mxu1 %v6095_v23 }
 0x358   :  { %4337 = vmatpush1.bf16.msra.mxu0 %v6090_v24  ;;  %4483 = vmatpush1.bf16.msra.mxu1 %v6093_v25 }
 0x359   :  { %4338 = vmatprep.subr.bf16.mxu0 %v6098_v26  ;;  %4484 = vmatprep.subr.bf16.mxu1 %v6101_v58 }
 0x35c   :  { %4339 = vmatpush1.bf16.msra.mxu0 %v6096_v27  ;;  %4485 = vmatpush1.bf16.msra.mxu1 %v6099_v0 }
 0x35d   :  { %4340 = vmatprep.subr.bf16.mxu0 %v6104_v30  ;;  %4486 = vmatprep.subr.bf16.mxu1 %v6107_v31 }
 0x360   :  { %4341 = vmatpush1.bf16.msra.mxu0 %v6102_v32  ;;  %4487 = vmatpush1.bf16.msra.mxu1 %v6105_v33 }
 0x361   :  { %4342 = vmatprep.subr.bf16.mxu0 %v6110_v34  ;;  %4488 = vmatprep.subr.bf16.mxu1 %v6113_v35 }
 0x364   :  { %4343 = vmatpush1.bf16.msra.mxu0 %v6108_v38  ;;  %4489 = vmatpush1.bf16.msra.mxu1 %v6111_v39 }
 0x365   :  { %4344 = vmatprep.subr.bf16.mxu0 %v6116_v40  ;;  %4490 = vmatprep.subr.bf16.mxu1 %v6119_v41 }
 0x368   :  { %4345 = vmatpush1.bf16.msra.mxu0 %v6114_v42  ;;  %4491 = vmatpush1.bf16.msra.mxu1 %v6117_v9 }
 0x36b   :  { %4347 = vmatmul.mubr.bf16.vlgmr.msra.gmra.mrb[32].mxu0 %v6498_v36  ;;  %4493 = vmatmul.mubr.bf16.vlgmr.msra.gmra.mrb[32].mxu1 %v6498_v36  ;;  %v3579_v36 = vld [vmem:[%s6653_s6] sm:$0xf]  ;;  %s6247_s6 = smov [#allocation10]  }
 0x36c   :  { %4356 = vmatprep.mubr.bf16.mxu0 %v6549_v63  ;;  %4502 = vmatprep.mubr.bf16.mxu1 %v6549_v63  ;;  %v6595_v63 = vrot.slane %v3579_v36, %v6356_v2  ;;  %v6601_v57 = vrot.slane %v3579_v36, %v6363_v5  ;;  %s4570_s29 = sshll.u32 %s6247_s6, 4  ;;  %s4571_s29 = int_to_ptr.vmem [resolvable:$true] %s4570_s29 }
 0x36d   :  { %s6208_s30 = scalar_lea.vmem %s4571_s29, 4096  ;;  %p6213_p5 = scmp.lt.s32.totalorder %s4571_s29, %s4571_s29 }
 0x36e   :  { %p6209_p4 = scmp.ne.s32.totalorder %s4571_s29, %s6208_s30  ;;  %p6214_p6 = scmp.lt.s32.totalorder %s6208_s30, %s6208_s30 }
 0x370   :  { %p6215_p7 = por %p6214_p6, %p6213_p5 }
 0x372   :  { %p6216_p8 = pnand %p6215_p7, %p6209_p4 }
 0x373   :  { %4357 = vmatmul.mubr.bf16.gmra.mrb[36].mxu0 %v6524_v29  ;;  %4503 = vmatmul.mubr.bf16.gmra.mrb[36].mxu1 %v6524_v29  ;;  %v6592_v29 = vrot.slane %v3579_v36, %v6354_v1 }
 0x374   :  { %4366 = vmatprep.mubr.bf16.mxu0 %v6566_v7  ;;  %4512 = vmatprep.mubr.bf16.mxu1 %v6566_v7 }
 0x37b   :  { %4367 = vmatmul.mubr.bf16.gmra.mrb[40].mxu0 %v6557_v28  ;;  %4513 = vmatmul.mubr.bf16.gmra.mrb[40].mxu1 %v6557_v28  ;;  %v6598_v28 = vrot.slane %v3579_v36, %v6361_v4 }
 0x37c   :  { %4376 = vmatprep.mubr.bf16.mxu0 %v6570_v61  ;;  %4522 = vmatprep.mubr.bf16.mxu1 %v6570_v61 }
 0x383   :  { %4377 = vmatmul.mubr.bf16.gmra.mrb[44].mxu0 %v6568_v56  ;;  %4523 = vmatmul.mubr.bf16.gmra.mrb[44].mxu1 %v6568_v56 }
 0x43e   :  { %v4348_v43 = vpop.f32.mrb[32].mxu0  ;;  %v4494_v44 = vpop.f32.mrb[32].mxu1 }
 0x43f   :  { %v5156_v47 = vadd.f32 %v4348_v43, %v6592_v29  ;;  %v5172_v48 = vadd.f32 %v4494_v44, %v6595_v63  ;;  %v4350_v49 = vpop.f32.mrb[33].mxu0  ;;  %v4496_v53 = vpop.f32.mrb[33].mxu1 }
 0x440   :  { %v5157_v1 = vadd.f32 %v4350_v49, %v6598_v28  ;;  %v5173_v60 = vadd.f32 %v4496_v53, %v6601_v57  ;;  %v4352_v2 = vpop.f32.mrb[34].mxu0  ;;  %v4498_v50 = vpop.f32.mrb[34].mxu1 }
 0x441   :  { %4533 = vst [vmem:[#allocation10] sm:$0xff] %v5156_v47  ;;  %4535 = vst [vmem:[#allocation10 + $0x10] sm:$0xff] %v5172_v48  ;;  %v5158_v4 = vadd.f32 %v4352_v2, %v6592_v29  ;;  %v5174_v5 = vadd.f32 %v4498_v50, %v6595_v63  ;;  %v4354_v7 = vpop.f32.mrb[35].mxu0  ;;  %v4500_v46 = vpop.f32.mrb[35].mxu1 }
 0x442   :  { %4534 = vst [vmem:[#allocation10 + $0x8] sm:$0xff] %v5157_v1  ;;  %4536 = vst [vmem:[#allocation10 + $0x18] sm:$0xff] %v5173_v60  ;;  %v5159_v51 = vadd.f32 %v4354_v7, %v6598_v28  ;;  %v5175_v52 = vadd.f32 %v4500_v46, %v6601_v57 }
 0x443   :  { %4537 = vst [vmem:[#allocation10 + $0x20] sm:$0xff] %v5158_v4  ;;  %4539 = vst [vmem:[#allocation10 + $0x30] sm:$0xff] %v5174_v5 }
 0x444   :  { %4538 = vst [vmem:[#allocation10 + $0x28] sm:$0xff] %v5159_v51  ;;  %4540 = vst [vmem:[#allocation10 + $0x38] sm:$0xff] %v5175_v52 }
 0x446   :  { %v4358_v54 = vpop.f32.mrb[36].mxu0  ;;  %v4504_v55 = vpop.f32.mrb[36].mxu1 }
 0x447   :  { %v5160_v56 = vadd.f32 %v4358_v54, %v6592_v29  ;;  %v5176_v8 = vadd.f32 %v4504_v55, %v6595_v63  ;;  %v4360_v62 = vpop.f32.mrb[37].mxu0  ;;  %v4506_v45 = vpop.f32.mrb[37].mxu1 }
 0x448   :  { %v5161_v61 = vadd.f32 %v4360_v62, %v6598_v28  ;;  %v5177_v14 = vadd.f32 %v4506_v45, %v6601_v57  ;;  %v4362_v3 = vpop.f32.mrb[38].mxu0  ;;  %v4508_v11 = vpop.f32.mrb[38].mxu1 }
 0x449   :  { %4541 = vst [vmem:[#allocation10 + $0x40] sm:$0xff] %v5160_v56  ;;  %4543 = vst [vmem:[#allocation10 + $0x50] sm:$0xff] %v5176_v8  ;;  %v5162_v12 = vadd.f32 %v4362_v3, %v6592_v29  ;;  %v5178_v13 = vadd.f32 %v4508_v11, %v6595_v63  ;;  %v4364_v15 = vpop.f32.mrb[39].mxu0  ;;  %v4510_v37 = vpop.f32.mrb[39].mxu1 }
 0x44a   :  { %4542 = vst [vmem:[#allocation10 + $0x48] sm:$0xff] %v5161_v61  ;;  %4544 = vst [vmem:[#allocation10 + $0x58] sm:$0xff] %v5177_v14  ;;  %v5163_v59 = vadd.f32 %v4364_v15, %v6598_v28  ;;  %v5179_v16 = vadd.f32 %v4510_v37, %v6601_v57 }
 0x44b   :  { %4545 = vst [vmem:[#allocation10 + $0x60] sm:$0xff] %v5162_v12  ;;  %4547 = vst [vmem:[#allocation10 + $0x70] sm:$0xff] %v5178_v13 }
 0x44c   :  { %4546 = vst [vmem:[#allocation10 + $0x68] sm:$0xff] %v5163_v59  ;;  %4548 = vst [vmem:[#allocation10 + $0x78] sm:$0xff] %v5179_v16 }
 0x44e   :  { %v4368_v17 = vpop.f32.mrb[40].mxu0  ;;  %v4514_v18 = vpop.f32.mrb[40].mxu1 }
 0x44f   :  { %v5164_v19 = vadd.f32 %v4368_v17, %v6592_v29  ;;  %v5180_v20 = vadd.f32 %v4514_v18, %v6595_v63  ;;  %v4370_v6 = vpop.f32.mrb[41].mxu0  ;;  %v4516_v21 = vpop.f32.mrb[41].mxu1 }
 0x450   :  { %v5165_v10 = vadd.f32 %v4370_v6, %v6598_v28  ;;  %v5181_v22 = vadd.f32 %v4516_v21, %v6601_v57  ;;  %v4372_v23 = vpop.f32.mrb[42].mxu0  ;;  %v4518_v24 = vpop.f32.mrb[42].mxu1 }
 0x451   :  { %4549 = vst [vmem:[#allocation10 + $0x80] sm:$0xff] %v5164_v19  ;;  %4551 = vst [vmem:[#allocation10 + $0x90] sm:$0xff] %v5180_v20  ;;  %v5166_v25 = vadd.f32 %v4372_v23, %v6592_v29  ;;  %v5182_v26 = vadd.f32 %v4518_v24, %v6595_v63  ;;  %v4374_v58 = vpop.f32.mrb[43].mxu0  ;;  %v4520_v27 = vpop.f32.mrb[43].mxu1 }
 0x452   :  { %4550 = vst [vmem:[#allocation10 + $0x88] sm:$0xff] %v5165_v10  ;;  %4552 = vst [vmem:[#allocation10 + $0x98] sm:$0xff] %v5181_v22  ;;  %v5167_v0 = vadd.f32 %v4374_v58, %v6598_v28  ;;  %v5183_v30 = vadd.f32 %v4520_v27, %v6601_v57 }
 0x453   :  { %4553 = vst [vmem:[#allocation10 + $0xa0] sm:$0xff] %v5166_v25  ;;  %4555 = vst [vmem:[#allocation10 + $0xb0] sm:$0xff] %v5182_v26 }
 0x454   :  { %4554 = vst [vmem:[#allocation10 + $0xa8] sm:$0xff] %v5167_v0  ;;  %4556 = vst [vmem:[#allocation10 + $0xb8] sm:$0xff] %v5183_v30 }
 0x456   :  { %v4378_v31 = vpop.f32.mrb[44].mxu0  ;;  %v4524_v32 = vpop.f32.mrb[44].mxu1 }
 0x457   :  { %v5168_v33 = vadd.f32 %v4378_v31, %v6592_v29  ;;  %v5184_v34 = vadd.f32 %v4524_v32, %v6595_v63  ;;  %v4380_v35 = vpop.f32.mrb[45].mxu0  ;;  %v4526_v38 = vpop.f32.mrb[45].mxu1 }
 0x458   :  { %v5169_v39 = vadd.f32 %v4380_v35, %v6598_v28  ;;  %v5185_v40 = vadd.f32 %v4526_v38, %v6601_v57  ;;  %v4382_v41 = vpop.f32.mrb[46].mxu0  ;;  %v4528_v42 = vpop.f32.mrb[46].mxu1 }
 0x459   :  { %4557 = vst [vmem:[#allocation10 + $0xc0] sm:$0xff] %v5168_v33  ;;  %4559 = vst [vmem:[#allocation10 + $0xd0] sm:$0xff] %v5184_v34  ;;  %v5170_v9 = vadd.f32 %v4382_v41, %v6592_v29  ;;  %v5186_v36 = vadd.f32 %v4528_v42, %v6595_v63  ;;  %v4384_v43 = vpop.f32.mrb[47].mxu0  ;;  %v4530_v44 = vpop.f32.mrb[47].mxu1 }
 0x45a   :  { %4558 = vst [vmem:[#allocation10 + $0xc8] sm:$0xff] %v5169_v39  ;;  %4560 = vst [vmem:[#allocation10 + $0xd8] sm:$0xff] %v5185_v40  ;;  %v5171_v47 = vadd.f32 %v4384_v43, %v6598_v28  ;;  %v5187_v48 = vadd.f32 %v4530_v44, %v6601_v57 }
 0x45b   :  { %4561 = vst [vmem:[#allocation10 + $0xe0] sm:$0xff] %v5170_v9  ;;  %4563 = vst [vmem:[#allocation10 + $0xf0] sm:$0xff] %v5186_v36 }
 0x45c   :  { %4562 = vst [vmem:[#allocation10 + $0xe8] sm:$0xff] %v5171_v47  ;;  %4564 = vst [vmem:[#allocation10 + $0xf8] sm:$0xff] %v5187_v48 }
 0x45d   :  { %6219 = shalt.err (!%p6216_p8)
}
 0x45e   :  { %s6220_s10 = scalar_lea.hbm %s6654_s7, 4096 }
 0x45f   :  { %p6221_p9 = scmp.ne.s32.totalorder %s6654_s7, %s6220_s10  ;;  %p6224_p10 = scmp.lt.u32.totalorder %s6220_s10, %s6654_s7 }
 0x461   :  { %p6226_p11 = pnand %p6224_p10, %p6221_p9 }
 0x463   :  { %6229 = shalt.err (!%p6226_p11)
}
 0x464   :  { %s6248_s18 = smov 512   ;;  %s6249_s0 = smov 32  }
 0x465   :  { %4576 = dma.vmem_to_hbm [thread:$0]  %s4571_s29, 4096, %s6654_s7, [#allocation4], %s6248_s18, %s6248_s18, %s6249_s0  }
 0x466   :  { %6236 = dma.done.wait [#allocation4], 4096  }
 0x467   :  { %6237 = vsyncadd [#allocation4], 4294963200 }
 0x468   :  { %4580 = vsyncpa [#allocation3], 1 }
 0x469   :  { %4581 = vsyncpa [#allocation6], 1 }
 0x46a   :  { %4582 = vsyncpa [#allocation9], 1 }
 0x46b   :  { %4583 = vsyncpa [#allocation4], 1 }

</bundles_post_ra>
